<compile_context>
chip_gen: v6e
topology: v6e:2x2x1
jax: 0.10.0
libtpu: 0.0.40
codegen_flags: <defaults>
</compile_context>

<pallas_src>
import functools
import math

import jax
import jax.numpy as jnp
from jax.experimental import pallas as pl
from jax.experimental.pallas import tpu as pltpu

EPS = 1e-6
NEG_INF = -1e9

BATCH = 2
SEQ = 8       # target sequence length
SRC_SEQ = 8   # source (encoder) sequence length
D_MODEL = 32
N_HEADS = 4
D_FF = 64

_WEIGHT_NAMES = ("ln_g", "ln_b",
                 "wqkv_s", "bqkv_s", "wo_s", "bo_s",
                 "wq_c", "bq_c", "wkv_c", "bkv_c", "wo_c", "bo_c",
                 "w1", "b1", "w2", "b2")


# --------------------------- fused Pallas kernel -----------------------------

def _decoder_block_kernel(
    x_ref, enc_ref, tmask_ref, smask_ref,
    ln_g_ref, ln_b_ref,
    wqkv_s_ref, bqkv_s_ref, wo_s_ref, bo_s_ref,
    wq_c_ref, bq_c_ref, wkv_c_ref, bkv_c_ref, wo_c_ref, bo_c_ref,
    w1_ref, b1_ref, w2_ref, b2_ref,
    o_ref,
    *, n_heads,
):
    D = x_ref.shape[-1]
    dk = D // n_heads

    def layer_norm(v, idx):                       # f32 elementwise path
        g = ln_g_ref[idx:idx + 1, :]
        b = ln_b_ref[idx:idx + 1, :]
        m = jnp.mean(v, axis=-1, keepdims=True)
        var = jnp.mean(jnp.square(v - m), axis=-1, keepdims=True)
        return (v - m) * jax.lax.rsqrt(var + EPS) * g + b

    def split_heads(t):
        # (s, D) bf16 -> (H, s, dk): static lane slices stacked on a new
        # leading axis (avoids an unsupported lane-splitting vector reshape).
        return jnp.stack([t[:, h * dk:(h + 1) * dk] for h in range(n_heads)],
                         axis=0)

    def mha(q2, k2, v2, add_mask):
        # q2: (sq, D) bf16; k2/v2: (sk, D) bf16; add_mask: (sq, sk) f32 additive.
        qh = split_heads(q2)                       # (H, sq, dk)
        kh = split_heads(k2)                       # (H, sk, dk)
        vh = split_heads(v2)                       # (H, sk, dk)
        # one head-batched score matmul (scale already folded into Wq/bq)
        s = jnp.einsum("hqd,hkd->hqk", qh, kh,
                       preferred_element_type=jnp.float32)
        s = s + add_mask[None, :, :]               # additive mask, one VPU add
        s = s - jnp.max(s, axis=-1, keepdims=True)
        p = jnp.exp(s)
        p = p * pl.reciprocal(jnp.sum(p, axis=-1, keepdims=True), approx=True)
        # one head-batched PV matmul
        o = jnp.einsum("hqk,hkd->hqd", p.astype(jnp.bfloat16), vh,
                       preferred_element_type=jnp.float32)  # (H, sq, dk) f32
        # merge heads back onto lanes
        return jnp.concatenate([o[h] for h in range(n_heads)], axis=-1)

    x = x_ref[0]                                   # (S, D) f32 residual stream
    enc_b = enc_ref[0].astype(jnp.bfloat16)        # (Ssrc, D) bf16
    tmask = tmask_ref[0]                           # (S, S)    f32 additive
    smask = smask_ref[0]                           # (S, Ssrc) f32 additive

    # ---- residual 1: self attention (fused QKV projection) ------------------
    h = layer_norm(x, 0).astype(jnp.bfloat16)
    qkv = (jnp.dot(h, wqkv_s_ref[...], preferred_element_type=jnp.float32)
           + bqkv_s_ref[...]).astype(jnp.bfloat16)              # (S, 3D)
    attn = mha(qkv[:, :D], qkv[:, D:2 * D], qkv[:, 2 * D:], tmask)
    attn = jnp.dot(attn.astype(jnp.bfloat16), wo_s_ref[...],
                   preferred_element_type=jnp.float32) + bo_s_ref[...]
    x = x + attn

    # ---- residual 2: cross attention (fused KV projection of encoder out) ---
    h = layer_norm(x, 1).astype(jnp.bfloat16)
    q = (jnp.dot(h, wq_c_ref[...], preferred_element_type=jnp.float32)
         + bq_c_ref[...]).astype(jnp.bfloat16)                   # (S, D)
    kv = (jnp.dot(enc_b, wkv_c_ref[...], preferred_element_type=jnp.float32)
          + bkv_c_ref[...]).astype(jnp.bfloat16)                 # (Ssrc, 2D)
    attn = mha(q, kv[:, :D], kv[:, D:], smask)
    attn = jnp.dot(attn.astype(jnp.bfloat16), wo_c_ref[...],
                   preferred_element_type=jnp.float32) + bo_c_ref[...]
    x = x + attn

    # ---- residual 3: feed-forward -------------------------------------------
    h = layer_norm(x, 2).astype(jnp.bfloat16)
    h1 = jnp.maximum(jnp.dot(h, w1_ref[...], preferred_element_type=jnp.float32)
                     + b1_ref[...], 0.0).astype(jnp.bfloat16)
    x = x + (jnp.dot(h1, w2_ref[...], preferred_element_type=jnp.float32)
             + b2_ref[...])

    o_ref[0] = x.astype(o_ref.dtype)


# --------------------------- parameter preparation ---------------------------

def prepare_params(params, n_heads=N_HEADS, weight_dtype=jnp.bfloat16):
    """One-time weight fusion / casting (done outside the per-call path)."""
    D = params["ln0_g"].shape[0]
    dk = D // n_heads
    scale = 1.0 / math.sqrt(dk)
    sa, ca, ff = params["self_attn"], params["cross_attn"], params["ffn"]
    f32 = jnp.float32
    return {
        "ln_g": jnp.stack([params["ln0_g"], params["ln1_g"], params["ln2_g"]]).astype(f32),
        "ln_b": jnp.stack([params["ln0_b"], params["ln1_b"], params["ln2_b"]]).astype(f32),
        # fused QKV; 1/sqrt(dk) folded into Wq and bq
        "wqkv_s": jnp.concatenate([sa["wq"] * scale, sa["wk"], sa["wv"]],
                                  axis=1).astype(weight_dtype),
        "bqkv_s": jnp.concatenate([sa["bq"] * scale, sa["bk"], sa["bv"]]
                                  ).reshape(1, 3 * D).astype(f32),
        "wo_s": sa["wo"].astype(weight_dtype),
        "bo_s": sa["bo"].reshape(1, D).astype(f32),
        "wq_c": (ca["wq"] * scale).astype(weight_dtype),
        "bq_c": (ca["bq"] * scale).reshape(1, D).astype(f32),
        "wkv_c": jnp.concatenate([ca["wk"], ca["wv"]], axis=1).astype(weight_dtype),
        "bkv_c": jnp.concatenate([ca["bk"], ca["bv"]]).reshape(1, 2 * D).astype(f32),
        "wo_c": ca["wo"].astype(weight_dtype),
        "bo_c": ca["bo"].reshape(1, D).astype(f32),
        "w1": ff["w1"].astype(weight_dtype),
        "b1": ff["b1"].reshape(1, -1).astype(f32),
        "w2": ff["w2"].astype(weight_dtype),
        "b2": ff["b2"].reshape(1, D).astype(f32),
    }


# --------------------------- wrapper -----------------------------------------

def decoder_block(x, enc_out, src_mask, target_mask, prep, n_heads=N_HEADS):
    B, S, D = x.shape
    Ssrc = enc_out.shape[1]

    # additive masks shared across heads (tiny, computed once per call in XLA)
    tmask_add = jnp.where(
        jnp.broadcast_to(target_mask, (B, 1, S, S)).reshape(B, S, S) == 0,
        NEG_INF, 0.0).astype(jnp.float32)
    smask_add = jnp.where(
        jnp.broadcast_to(src_mask, (B, 1, S, Ssrc)).reshape(B, S, Ssrc) == 0,
        NEG_INF, 0.0).astype(jnp.float32)

    weights = [prep[name] for name in _WEIGHT_NAMES]

    def batch_spec(rows, cols):
        return pl.BlockSpec((1, rows, cols), lambda b: (b, 0, 0))

    def resident_spec(arr):
        return pl.BlockSpec(arr.shape, lambda b: (0, 0))   # stays in VMEM

    in_specs = ([batch_spec(S, D), batch_spec(Ssrc, D),
                 batch_spec(S, S), batch_spec(S, Ssrc)]
                + [resident_spec(w) for w in weights])

    out = pl.pallas_call(
        functools.partial(_decoder_block_kernel, n_heads=n_heads),
        grid=(B,),
        in_specs=in_specs,
        out_specs=batch_spec(S, D),
        out_shape=jax.ShapeDtypeStruct((B, S, D), x.dtype),
        compiler_params=pltpu.CompilerParams(
            dimension_semantics=("parallel",)),
    )(x, enc_out, tmask_add, smask_add, *weights)
    return out


# --------------------------- pure-JAX reference ------------------------------

def _ref_ln(x, g, b):
    m = x.mean(-1, keepdims=True)
    v = ((x - m) ** 2).mean(-1, keepdims=True)
    return (x - m) / jnp.sqrt(v + EPS) * g + b


def _ref_mha(q_in, kv_in, mask, p, n_heads):
    B, Sq, D = q_in.shape
    Sk = kv_in.shape[1]
    dk = D // n_heads
    q = (q_in @ p["wq"] + p["bq"]).reshape(B, Sq, n_heads, dk).transpose(0, 2, 1, 3)
    k = (kv_in @ p["wk"] + p["bk"]).reshape(B, Sk, n_heads, dk).transpose(0, 2, 1, 3)
    v = (kv_in @ p["wv"] + p["bv"]).reshape(B, Sk, n_heads, dk).transpose(0, 2, 1, 3)
    s = jnp.einsum("bhqd,bhkd->bhqk", q, k) / math.sqrt(dk)
    s = jnp.where(mask == 0, NEG_INF, s)
    a = jax.nn.softmax(s, axis=-1)
    o = jnp.einsum("bhqk,bhkd->bhqd", a, v).transpose(0, 2, 1, 3).reshape(B, Sq, D)
    return o @ p["wo"] + p["bo"]


def _ref_decoder_block(x, enc_out, src_mask, target_mask, P):
    h = _ref_ln(x, P["ln0_g"], P["ln0_b"])
    x = x + _ref_mha(h, h, target_mask, P["self_attn"], N_HEADS)
    h = _ref_ln(x, P["ln1_g"], P["ln1_b"])
    x = x + _ref_mha(h, enc_out, src_mask, P["cross_attn"], N_HEADS)
    h = _ref_ln(x, P["ln2_g"], P["ln2_b"])
    ff = P["ffn"]
    x = x + (jnp.maximum(h @ ff["w1"] + ff["b1"], 0.0) @ ff["w2"] + ff["b2"])
    return x


# --------------------------- setup & run --------------------------------------

def _init_params(key):
    ks = list(jax.random.split(key, 16))

    def dense(k, fan_in, fan_out):
        return jax.random.normal(k, (fan_in, fan_out), jnp.float32) * (1.0 / math.sqrt(fan_in))

    def attn_params(k):
        k1, k2, k3, k4 = jax.random.split(k, 4)
        return {
            "wq": dense(k1, D_MODEL, D_MODEL), "bq": jnp.zeros((D_MODEL,), jnp.float32),
            "wk": dense(k2, D_MODEL, D_MODEL), "bk": jnp.zeros((D_MODEL,), jnp.float32),
            "wv": dense(k3, D_MODEL, D_MODEL), "bv": jnp.zeros((D_MODEL,), jnp.float32),
            "wo": dense(k4, D_MODEL, D_MODEL), "bo": jnp.zeros((D_MODEL,), jnp.float32),
        }

    return {
        "ln0_g": jnp.ones((D_MODEL,), jnp.float32), "ln0_b": jnp.zeros((D_MODEL,), jnp.float32),
        "ln1_g": jnp.ones((D_MODEL,), jnp.float32), "ln1_b": jnp.zeros((D_MODEL,), jnp.float32),
        "ln2_g": jnp.ones((D_MODEL,), jnp.float32), "ln2_b": jnp.zeros((D_MODEL,), jnp.float32),
        "self_attn": attn_params(ks[0]),
        "cross_attn": attn_params(ks[1]),
        "ffn": {
            "w1": dense(ks[2], D_MODEL, D_FF), "b1": jnp.zeros((D_FF,), jnp.float32),
            "w2": dense(ks[3], D_FF, D_MODEL), "b2": jnp.zeros((D_MODEL,), jnp.float32),
        },
    }


if __name__ == "__main__":
    key = jax.random.PRNGKey(0)
    kx, ke, kp = jax.random.split(key, 3)

    x = jax.random.normal(kx, (BATCH, SEQ, D_MODEL), jnp.float32)
    enc_out = jax.random.normal(ke, (BATCH, SRC_SEQ, D_MODEL), jnp.float32)

    # target_mask: causal (B, 1, Sq, Sq); src_mask: padding (B, 1, 1, Sk)
    target_mask = jnp.tril(jnp.ones((SEQ, SEQ), jnp.int32))[None, None, :, :]
    target_mask = jnp.broadcast_to(target_mask, (BATCH, 1, SEQ, SEQ))
    src_lens = jnp.array([SRC_SEQ, SRC_SEQ - 2], jnp.int32)
    src_mask = (jnp.arange(SRC_SEQ)[None, :] < src_lens[:, None]).astype(jnp.int32)
    src_mask = src_mask[:, None, None, :]  # (B, 1, 1, Sk)

    params = _init_params(kp)
    prep = prepare_params(params)          # one-time weight fusion / bf16 cast

    run = jax.jit(decoder_block)
    out = run(x, enc_out, src_mask, target_mask, prep)
    out = jax.block_until_ready(out)

    ref = _ref_decoder_block(x, enc_out, src_mask, target_mask, params)
    assert out.shape == (BATCH, SEQ, D_MODEL)
    # bf16 MXU operands + approx reciprocal perturb results slightly vs f32 ref.
    max_err = float(jnp.max(jnp.abs(out - ref)))
    assert jnp.allclose(out, ref, atol=5e-2, rtol=5e-2), max_err

    print("KERNEL_OK")
</pallas_src>

<mosaic_0001>
module attributes {stable_mosaic.version = 11 : i64} {
  func.func @_decoder_block_kernel(%arg0: i32, %arg1: memref<1x8x32xf32, #tpu.memory_space<vmem>>, %arg2: memref<1x8x32xf32, #tpu.memory_space<vmem>>, %arg3: memref<1x8x8xf32, #tpu.memory_space<vmem>>, %arg4: memref<1x8x8xf32, #tpu.memory_space<vmem>>, %arg5: memref<3x32xf32, #tpu.memory_space<vmem>>, %arg6: memref<3x32xf32, #tpu.memory_space<vmem>>, %arg7: memref<32x96xbf16, #tpu.memory_space<vmem>>, %arg8: memref<1x96xf32, #tpu.memory_space<vmem>>, %arg9: memref<32x32xbf16, #tpu.memory_space<vmem>>, %arg10: memref<1x32xf32, #tpu.memory_space<vmem>>, %arg11: memref<32x32xbf16, #tpu.memory_space<vmem>>, %arg12: memref<1x32xf32, #tpu.memory_space<vmem>>, %arg13: memref<32x64xbf16, #tpu.memory_space<vmem>>, %arg14: memref<1x64xf32, #tpu.memory_space<vmem>>, %arg15: memref<32x32xbf16, #tpu.memory_space<vmem>>, %arg16: memref<1x32xf32, #tpu.memory_space<vmem>>, %arg17: memref<32x64xbf16, #tpu.memory_space<vmem>>, %arg18: memref<1x64xf32, #tpu.memory_space<vmem>>, %arg19: memref<64x32xbf16, #tpu.memory_space<vmem>>, %arg20: memref<1x32xf32, #tpu.memory_space<vmem>>, %arg21: memref<1x8x32xf32, #tpu.memory_space<vmem>>) attributes {dimension_semantics = [#tpu.dimension_semantics<parallel>], iteration_bounds = array<i64: 2>, scalar_prefetch = 0 : i64, scratch_operands = 0 : i64, tpu.core_type = #tpu.core_type<tc>, window_params = [{transform_indices = @transform_0, window_bounds = array<i64: 1, 8, 32>}, {transform_indices = @transform_1, window_bounds = array<i64: 1, 8, 32>}, {transform_indices = @transform_2, window_bounds = array<i64: 1, 8, 8>}, {transform_indices = @transform_3, window_bounds = array<i64: 1, 8, 8>}, {pipeline_mode = #tpu.pipeline_mode<synchronous>, transform_indices = @transform_4, window_bounds = array<i64: 3, 32>}, {pipeline_mode = #tpu.pipeline_mode<synchronous>, transform_indices = @transform_5, window_bounds = array<i64: 3, 32>}, {pipeline_mode = #tpu.pipeline_mode<synchronous>, transform_indices = @transform_6, window_bounds = array<i64: 32, 96>}, {pipeline_mode = #tpu.pipeline_mode<synchronous>, transform_indices = @transform_7, window_bounds = array<i64: 1, 96>}, {pipeline_mode = #tpu.pipeline_mode<synchronous>, transform_indices = @transform_8, window_bounds = array<i64: 32, 32>}, {pipeline_mode = #tpu.pipeline_mode<synchronous>, transform_indices = @transform_9, window_bounds = array<i64: 1, 32>}, {pipeline_mode = #tpu.pipeline_mode<synchronous>, transform_indices = @transform_10, window_bounds = array<i64: 32, 32>}, {pipeline_mode = #tpu.pipeline_mode<synchronous>, transform_indices = @transform_11, window_bounds = array<i64: 1, 32>}, {pipeline_mode = #tpu.pipeline_mode<synchronous>, transform_indices = @transform_12, window_bounds = array<i64: 32, 64>}, {pipeline_mode = #tpu.pipeline_mode<synchronous>, transform_indices = @transform_13, window_bounds = array<i64: 1, 64>}, {pipeline_mode = #tpu.pipeline_mode<synchronous>, transform_indices = @transform_14, window_bounds = array<i64: 32, 32>}, {pipeline_mode = #tpu.pipeline_mode<synchronous>, transform_indices = @transform_15, window_bounds = array<i64: 1, 32>}, {pipeline_mode = #tpu.pipeline_mode<synchronous>, transform_indices = @transform_16, window_bounds = array<i64: 32, 64>}, {pipeline_mode = #tpu.pipeline_mode<synchronous>, transform_indices = @transform_17, window_bounds = array<i64: 1, 64>}, {pipeline_mode = #tpu.pipeline_mode<synchronous>, transform_indices = @transform_18, window_bounds = array<i64: 64, 32>}, {pipeline_mode = #tpu.pipeline_mode<synchronous>, transform_indices = @transform_19, window_bounds = array<i64: 1, 32>}, {transform_indices = @transform_20, window_bounds = array<i64: 1, 8, 32>}]} {
    %c0 = arith.constant 0 : index
    %c0_0 = arith.constant 0 : index
    %c0_1 = arith.constant 0 : index
    %0 = vector.load %arg1[%c0, %c0_0, %c0_1] : memref<1x8x32xf32, #tpu.memory_space<vmem>>, vector<1x8x32xf32>
    %1 = vector.shape_cast %0 : vector<1x8x32xf32> to vector<8x32xf32>
    %c0_2 = arith.constant 0 : index
    %c0_3 = arith.constant 0 : index
    %c0_4 = arith.constant 0 : index
    %2 = vector.load %arg2[%c0_2, %c0_3, %c0_4] : memref<1x8x32xf32, #tpu.memory_space<vmem>>, vector<1x8x32xf32>
    %3 = vector.shape_cast %2 : vector<1x8x32xf32> to vector<8x32xf32>
    %4 = arith.truncf %3 : vector<8x32xf32> to vector<8x32xbf16>
    %c0_5 = arith.constant 0 : index
    %c0_6 = arith.constant 0 : index
    %c0_7 = arith.constant 0 : index
    %5 = vector.load %arg3[%c0_5, %c0_6, %c0_7] : memref<1x8x8xf32, #tpu.memory_space<vmem>>, vector<1x8x8xf32>
    %6 = vector.shape_cast %5 : vector<1x8x8xf32> to vector<8x8xf32>
    %c0_8 = arith.constant 0 : index
    %c0_9 = arith.constant 0 : index
    %c0_10 = arith.constant 0 : index
    %7 = vector.load %arg4[%c0_8, %c0_9, %c0_10] : memref<1x8x8xf32, #tpu.memory_space<vmem>>, vector<1x8x8xf32>
    %8 = vector.shape_cast %7 : vector<1x8x8xf32> to vector<8x8xf32>
    %c0_11 = arith.constant 0 : index
    %c0_12 = arith.constant 0 : index
    %9 = vector.load %arg5[%c0_11, %c0_12] : memref<3x32xf32, #tpu.memory_space<vmem>>, vector<1x32xf32>
    %c0_13 = arith.constant 0 : index
    %c0_14 = arith.constant 0 : index
    %10 = vector.load %arg6[%c0_13, %c0_14] : memref<3x32xf32, #tpu.memory_space<vmem>>, vector<1x32xf32>
    %cst = arith.constant dense<0.000000e+00> : vector<8xf32>
    %11 = vector.multi_reduction <add>, %1, %cst [1] : vector<8x32xf32> to vector<8xf32>
    %12 = vector.shape_cast %11 : vector<8xf32> to vector<8x1xf32>
    %cst_15 = arith.constant 3.200000e+01 : f32
    %13 = vector.broadcast %cst_15 : f32 to vector<8x1xf32>
    %14 = arith.divf %12, %13 : vector<8x1xf32>
    %15 = vector.broadcast %14 : vector<8x1xf32> to vector<8x32xf32>
    %16 = arith.subf %1, %15 : vector<8x32xf32>
    %17 = arith.mulf %16, %16 : vector<8x32xf32>
    %cst_16 = arith.constant dense<0.000000e+00> : vector<8xf32>
    %18 = vector.multi_reduction <add>, %17, %cst_16 [1] : vector<8x32xf32> to vector<8xf32>
    %19 = vector.shape_cast %18 : vector<8xf32> to vector<8x1xf32>
    %cst_17 = arith.constant 3.200000e+01 : f32
    %20 = vector.broadcast %cst_17 : f32 to vector<8x1xf32>
    %21 = arith.divf %19, %20 : vector<8x1xf32>
    %22 = vector.broadcast %14 : vector<8x1xf32> to vector<8x32xf32>
    %23 = arith.subf %1, %22 : vector<8x32xf32>
    %cst_18 = arith.constant 9.99999997E-7 : f32
    %24 = vector.broadcast %cst_18 : f32 to vector<8x1xf32>
    %25 = arith.addf %21, %24 : vector<8x1xf32>
    %26 = math.rsqrt %25 : vector<8x1xf32>
    %27 = vector.broadcast %26 : vector<8x1xf32> to vector<8x32xf32>
    %28 = arith.mulf %23, %27 : vector<8x32xf32>
    %29 = vector.broadcast %9 : vector<1x32xf32> to vector<8x32xf32>
    %30 = arith.mulf %28, %29 : vector<8x32xf32>
    %31 = vector.broadcast %10 : vector<1x32xf32> to vector<8x32xf32>
    %32 = arith.addf %30, %31 : vector<8x32xf32>
    %33 = arith.truncf %32 : vector<8x32xf32> to vector<8x32xbf16>
    %c0_19 = arith.constant 0 : index
    %c0_20 = arith.constant 0 : index
    %34 = vector.load %arg7[%c0_19, %c0_20] : memref<32x96xbf16, #tpu.memory_space<vmem>>, vector<32x96xbf16>
    %cst_21 = arith.constant dense<0.000000e+00> : vector<8x96xf32>
    %35 = tpu.matmul %33, %34, %cst_21 {dimension_numbers = #tpu.dot_dimension_numbers<[1], [0], [0], [1], [0, 0, 1, 1], [], []>} : vector<8x32xbf16>, vector<32x96xbf16>, vector<8x96xf32> -> vector<8x96xf32>
    %c0_22 = arith.constant 0 : index
    %c0_23 = arith.constant 0 : index
    %36 = vector.load %arg8[%c0_22, %c0_23] : memref<1x96xf32, #tpu.memory_space<vmem>>, vector<1x96xf32>
    %37 = vector.broadcast %36 : vector<1x96xf32> to vector<8x96xf32>
    %38 = arith.addf %35, %37 : vector<8x96xf32>
    %39 = arith.truncf %38 : vector<8x96xf32> to vector<8x96xbf16>
    %40 = vector.extract_strided_slice %39 {offsets = [0, 0], sizes = [8, 32], strides = [1, 1]} : vector<8x96xbf16> to vector<8x32xbf16>
    %41 = vector.extract_strided_slice %39 {offsets = [0, 32], sizes = [8, 32], strides = [1, 1]} : vector<8x96xbf16> to vector<8x32xbf16>
    %42 = vector.extract_strided_slice %39 {offsets = [0, 64], sizes = [8, 32], strides = [1, 1]} : vector<8x96xbf16> to vector<8x32xbf16>
    %43 = vector.extract_strided_slice %40 {offsets = [0, 0], sizes = [8, 8], strides = [1, 1]} : vector<8x32xbf16> to vector<8x8xbf16>
    %44 = vector.extract_strided_slice %40 {offsets = [0, 8], sizes = [8, 8], strides = [1, 1]} : vector<8x32xbf16> to vector<8x8xbf16>
    %45 = vector.extract_strided_slice %40 {offsets = [0, 16], sizes = [8, 8], strides = [1, 1]} : vector<8x32xbf16> to vector<8x8xbf16>
    %46 = vector.extract_strided_slice %40 {offsets = [0, 24], sizes = [8, 8], strides = [1, 1]} : vector<8x32xbf16> to vector<8x8xbf16>
    %47 = vector.shape_cast %43 : vector<8x8xbf16> to vector<1x8x8xbf16>
    %48 = vector.shape_cast %44 : vector<8x8xbf16> to vector<1x8x8xbf16>
    %49 = vector.shape_cast %45 : vector<8x8xbf16> to vector<1x8x8xbf16>
    %50 = vector.shape_cast %46 : vector<8x8xbf16> to vector<1x8x8xbf16>
    %51 = tpu.concatenate %47, %48, %49, %50 in 0 : vector<1x8x8xbf16>, vector<1x8x8xbf16>, vector<1x8x8xbf16>, vector<1x8x8xbf16> -> vector<4x8x8xbf16>
    %52 = vector.extract_strided_slice %41 {offsets = [0, 0], sizes = [8, 8], strides = [1, 1]} : vector<8x32xbf16> to vector<8x8xbf16>
    %53 = vector.extract_strided_slice %41 {offsets = [0, 8], sizes = [8, 8], strides = [1, 1]} : vector<8x32xbf16> to vector<8x8xbf16>
    %54 = vector.extract_strided_slice %41 {offsets = [0, 16], sizes = [8, 8], strides = [1, 1]} : vector<8x32xbf16> to vector<8x8xbf16>
    %55 = vector.extract_strided_slice %41 {offsets = [0, 24], sizes = [8, 8], strides = [1, 1]} : vector<8x32xbf16> to vector<8x8xbf16>
    %56 = vector.shape_cast %52 : vector<8x8xbf16> to vector<1x8x8xbf16>
    %57 = vector.shape_cast %53 : vector<8x8xbf16> to vector<1x8x8xbf16>
    %58 = vector.shape_cast %54 : vector<8x8xbf16> to vector<1x8x8xbf16>
    %59 = vector.shape_cast %55 : vector<8x8xbf16> to vector<1x8x8xbf16>
    %60 = tpu.concatenate %56, %57, %58, %59 in 0 : vector<1x8x8xbf16>, vector<1x8x8xbf16>, vector<1x8x8xbf16>, vector<1x8x8xbf16> -> vector<4x8x8xbf16>
    %61 = vector.extract_strided_slice %42 {offsets = [0, 0], sizes = [8, 8], strides = [1, 1]} : vector<8x32xbf16> to vector<8x8xbf16>
    %62 = vector.extract_strided_slice %42 {offsets = [0, 8], sizes = [8, 8], strides = [1, 1]} : vector<8x32xbf16> to vector<8x8xbf16>
    %63 = vector.extract_strided_slice %42 {offsets = [0, 16], sizes = [8, 8], strides = [1, 1]} : vector<8x32xbf16> to vector<8x8xbf16>
    %64 = vector.extract_strided_slice %42 {offsets = [0, 24], sizes = [8, 8], strides = [1, 1]} : vector<8x32xbf16> to vector<8x8xbf16>
    %65 = vector.shape_cast %61 : vector<8x8xbf16> to vector<1x8x8xbf16>
    %66 = vector.shape_cast %62 : vector<8x8xbf16> to vector<1x8x8xbf16>
    %67 = vector.shape_cast %63 : vector<8x8xbf16> to vector<1x8x8xbf16>
    %68 = vector.shape_cast %64 : vector<8x8xbf16> to vector<1x8x8xbf16>
    %69 = tpu.concatenate %65, %66, %67, %68 in 0 : vector<1x8x8xbf16>, vector<1x8x8xbf16>, vector<1x8x8xbf16>, vector<1x8x8xbf16> -> vector<4x8x8xbf16>
    "tpu.trace_start"() <{level = 10 : i32, message = "hqd,hkd->hqk"}> : () -> ()
    %cst_24 = arith.constant dense<0.000000e+00> : vector<4x8x8xf32>
    %70 = tpu.matmul %51, %60, %cst_24 {dimension_numbers = #tpu.dot_dimension_numbers<[2], [2], [1], [1], [0, 0, 0, 1, 1, 1], [0], [0]>} : vector<4x8x8xbf16>, vector<4x8x8xbf16>, vector<4x8x8xf32> -> vector<4x8x8xf32>
    "tpu.trace_stop"() : () -> ()
    %71 = vector.shape_cast %6 : vector<8x8xf32> to vector<1x8x8xf32>
    %72 = vector.broadcast %71 : vector<1x8x8xf32> to vector<4x8x8xf32>
    %73 = arith.addf %70, %72 : vector<4x8x8xf32>
    %cst_25 = arith.constant dense<0xFF800000> : vector<4x8xf32>
    %74 = vector.multi_reduction <maximumf>, %73, %cst_25 [2] : vector<4x8x8xf32> to vector<4x8xf32>
    %75 = vector.shape_cast %74 : vector<4x8xf32> to vector<4x8x1xf32>
    %76 = vector.broadcast %75 : vector<4x8x1xf32> to vector<4x8x8xf32>
    %77 = arith.subf %73, %76 : vector<4x8x8xf32>
    %78 = math.exp %77 : vector<4x8x8xf32>
    %cst_26 = arith.constant dense<0.000000e+00> : vector<4x8xf32>
    %79 = vector.multi_reduction <add>, %78, %cst_26 [2] : vector<4x8x8xf32> to vector<4x8xf32>
    %80 = vector.shape_cast %79 : vector<4x8xf32> to vector<4x8x1xf32>
    %81 = tpu.reciprocal %80 {approx = true} : vector<4x8x1xf32> -> vector<4x8x1xf32>
    %82 = vector.broadcast %81 : vector<4x8x1xf32> to vector<4x8x8xf32>
    %83 = arith.mulf %78, %82 : vector<4x8x8xf32>
    %84 = arith.truncf %83 : vector<4x8x8xf32> to vector<4x8x8xbf16>
    "tpu.trace_start"() <{level = 10 : i32, message = "hqk,hkd->hqd"}> : () -> ()
    %cst_27 = arith.constant dense<0.000000e+00> : vector<4x8x8xf32>
    %85 = tpu.matmul %84, %69, %cst_27 {dimension_numbers = #tpu.dot_dimension_numbers<[2], [1], [1], [2], [0, 0, 0, 1, 1, 2], [0], [0]>} : vector<4x8x8xbf16>, vector<4x8x8xbf16>, vector<4x8x8xf32> -> vector<4x8x8xf32>
    "tpu.trace_stop"() : () -> ()
    %86 = vector.extract_strided_slice %85 {offsets = [0, 0, 0], sizes = [1, 8, 8], strides = [1, 1, 1]} : vector<4x8x8xf32> to vector<1x8x8xf32>
    %87 = vector.shape_cast %86 : vector<1x8x8xf32> to vector<8x8xf32>
    %88 = vector.extract_strided_slice %85 {offsets = [1, 0, 0], sizes = [1, 8, 8], strides = [1, 1, 1]} : vector<4x8x8xf32> to vector<1x8x8xf32>
    %89 = vector.shape_cast %88 : vector<1x8x8xf32> to vector<8x8xf32>
    %90 = vector.extract_strided_slice %85 {offsets = [2, 0, 0], sizes = [1, 8, 8], strides = [1, 1, 1]} : vector<4x8x8xf32> to vector<1x8x8xf32>
    %91 = vector.shape_cast %90 : vector<1x8x8xf32> to vector<8x8xf32>
    %92 = vector.extract_strided_slice %85 {offsets = [3, 0, 0], sizes = [1, 8, 8], strides = [1, 1, 1]} : vector<4x8x8xf32> to vector<1x8x8xf32>
    %93 = vector.shape_cast %92 : vector<1x8x8xf32> to vector<8x8xf32>
    %94 = tpu.concatenate %87, %89, %91, %93 in 1 : vector<8x8xf32>, vector<8x8xf32>, vector<8x8xf32>, vector<8x8xf32> -> vector<8x32xf32>
    %95 = arith.truncf %94 : vector<8x32xf32> to vector<8x32xbf16>
    %c0_28 = arith.constant 0 : index
    %c0_29 = arith.constant 0 : index
    %96 = vector.load %arg9[%c0_28, %c0_29] : memref<32x32xbf16, #tpu.memory_space<vmem>>, vector<32x32xbf16>
    %cst_30 = arith.constant dense<0.000000e+00> : vector<8x32xf32>
    %97 = tpu.matmul %95, %96, %cst_30 {dimension_numbers = #tpu.dot_dimension_numbers<[1], [0], [0], [1], [0, 0, 1, 1], [], []>} : vector<8x32xbf16>, vector<32x32xbf16>, vector<8x32xf32> -> vector<8x32xf32>
    %c0_31 = arith.constant 0 : index
    %c0_32 = arith.constant 0 : index
    %98 = vector.load %arg10[%c0_31, %c0_32] : memref<1x32xf32, #tpu.memory_space<vmem>>, vector<1x32xf32>
    %99 = vector.broadcast %98 : vector<1x32xf32> to vector<8x32xf32>
    %100 = arith.addf %97, %99 : vector<8x32xf32>
    %101 = arith.addf %1, %100 : vector<8x32xf32>
    %c1 = arith.constant 1 : index
    %c0_33 = arith.constant 0 : index
    %102 = vector.load %arg5[%c1, %c0_33] : memref<3x32xf32, #tpu.memory_space<vmem>>, vector<1x32xf32>
    %c1_34 = arith.constant 1 : index
    %c0_35 = arith.constant 0 : index
    %103 = vector.load %arg6[%c1_34, %c0_35] : memref<3x32xf32, #tpu.memory_space<vmem>>, vector<1x32xf32>
    %cst_36 = arith.constant dense<0.000000e+00> : vector<8xf32>
    %104 = vector.multi_reduction <add>, %101, %cst_36 [1] : vector<8x32xf32> to vector<8xf32>
    %105 = vector.shape_cast %104 : vector<8xf32> to vector<8x1xf32>
    %cst_37 = arith.constant 3.200000e+01 : f32
    %106 = vector.broadcast %cst_37 : f32 to vector<8x1xf32>
    %107 = arith.divf %105, %106 : vector<8x1xf32>
    %108 = vector.broadcast %107 : vector<8x1xf32> to vector<8x32xf32>
    %109 = arith.subf %101, %108 : vector<8x32xf32>
    %110 = arith.mulf %109, %109 : vector<8x32xf32>
    %cst_38 = arith.constant dense<0.000000e+00> : vector<8xf32>
    %111 = vector.multi_reduction <add>, %110, %cst_38 [1] : vector<8x32xf32> to vector<8xf32>
    %112 = vector.shape_cast %111 : vector<8xf32> to vector<8x1xf32>
    %cst_39 = arith.constant 3.200000e+01 : f32
    %113 = vector.broadcast %cst_39 : f32 to vector<8x1xf32>
    %114 = arith.divf %112, %113 : vector<8x1xf32>
    %115 = vector.broadcast %107 : vector<8x1xf32> to vector<8x32xf32>
    %116 = arith.subf %101, %115 : vector<8x32xf32>
    %cst_40 = arith.constant 9.99999997E-7 : f32
    %117 = vector.broadcast %cst_40 : f32 to vector<8x1xf32>
    %118 = arith.addf %114, %117 : vector<8x1xf32>
    %119 = math.rsqrt %118 : vector<8x1xf32>
    %120 = vector.broadcast %119 : vector<8x1xf32> to vector<8x32xf32>
    %121 = arith.mulf %116, %120 : vector<8x32xf32>
    %122 = vector.broadcast %102 : vector<1x32xf32> to vector<8x32xf32>
    %123 = arith.mulf %121, %122 : vector<8x32xf32>
    %124 = vector.broadcast %103 : vector<1x32xf32> to vector<8x32xf32>
    %125 = arith.addf %123, %124 : vector<8x32xf32>
    %126 = arith.truncf %125 : vector<8x32xf32> to vector<8x32xbf16>
    %c0_41 = arith.constant 0 : index
    %c0_42 = arith.constant 0 : index
    %127 = vector.load %arg11[%c0_41, %c0_42] : memref<32x32xbf16, #tpu.memory_space<vmem>>, vector<32x32xbf16>
    %cst_43 = arith.constant dense<0.000000e+00> : vector<8x32xf32>
    %128 = tpu.matmul %126, %127, %cst_43 {dimension_numbers = #tpu.dot_dimension_numbers<[1], [0], [0], [1], [0, 0, 1, 1], [], []>} : vector<8x32xbf16>, vector<32x32xbf16>, vector<8x32xf32> -> vector<8x32xf32>
    %c0_44 = arith.constant 0 : index
    %c0_45 = arith.constant 0 : index
    %129 = vector.load %arg12[%c0_44, %c0_45] : memref<1x32xf32, #tpu.memory_space<vmem>>, vector<1x32xf32>
    %130 = vector.broadcast %129 : vector<1x32xf32> to vector<8x32xf32>
    %131 = arith.addf %128, %130 : vector<8x32xf32>
    %132 = arith.truncf %131 : vector<8x32xf32> to vector<8x32xbf16>
    %c0_46 = arith.constant 0 : index
    %c0_47 = arith.constant 0 : index
    %133 = vector.load %arg13[%c0_46, %c0_47] : memref<32x64xbf16, #tpu.memory_space<vmem>>, vector<32x64xbf16>
    %cst_48 = arith.constant dense<0.000000e+00> : vector<8x64xf32>
    %134 = tpu.matmul %4, %133, %cst_48 {dimension_numbers = #tpu.dot_dimension_numbers<[1], [0], [0], [1], [0, 0, 1, 1], [], []>} : vector<8x32xbf16>, vector<32x64xbf16>, vector<8x64xf32> -> vector<8x64xf32>
    %c0_49 = arith.constant 0 : index
    %c0_50 = arith.constant 0 : index
    %135 = vector.load %arg14[%c0_49, %c0_50] : memref<1x64xf32, #tpu.memory_space<vmem>>, vector<1x64xf32>
    %136 = vector.broadcast %135 : vector<1x64xf32> to vector<8x64xf32>
    %137 = arith.addf %134, %136 : vector<8x64xf32>
    %138 = arith.truncf %137 : vector<8x64xf32> to vector<8x64xbf16>
    %139 = vector.extract_strided_slice %138 {offsets = [0, 0], sizes = [8, 32], strides = [1, 1]} : vector<8x64xbf16> to vector<8x32xbf16>
    %140 = vector.extract_strided_slice %138 {offsets = [0, 32], sizes = [8, 32], strides = [1, 1]} : vector<8x64xbf16> to vector<8x32xbf16>
    %141 = vector.extract_strided_slice %132 {offsets = [0, 0], sizes = [8, 8], strides = [1, 1]} : vector<8x32xbf16> to vector<8x8xbf16>
    %142 = vector.extract_strided_slice %132 {offsets = [0, 8], sizes = [8, 8], strides = [1, 1]} : vector<8x32xbf16> to vector<8x8xbf16>
    %143 = vector.extract_strided_slice %132 {offsets = [0, 16], sizes = [8, 8], strides = [1, 1]} : vector<8x32xbf16> to vector<8x8xbf16>
    %144 = vector.extract_strided_slice %132 {offsets = [0, 24], sizes = [8, 8], strides = [1, 1]} : vector<8x32xbf16> to vector<8x8xbf16>
    %145 = vector.shape_cast %141 : vector<8x8xbf16> to vector<1x8x8xbf16>
    %146 = vector.shape_cast %142 : vector<8x8xbf16> to vector<1x8x8xbf16>
    %147 = vector.shape_cast %143 : vector<8x8xbf16> to vector<1x8x8xbf16>
    %148 = vector.shape_cast %144 : vector<8x8xbf16> to vector<1x8x8xbf16>
    %149 = tpu.concatenate %145, %146, %147, %148 in 0 : vector<1x8x8xbf16>, vector<1x8x8xbf16>, vector<1x8x8xbf16>, vector<1x8x8xbf16> -> vector<4x8x8xbf16>
    %150 = vector.extract_strided_slice %139 {offsets = [0, 0], sizes = [8, 8], strides = [1, 1]} : vector<8x32xbf16> to vector<8x8xbf16>
    %151 = vector.extract_strided_slice %139 {offsets = [0, 8], sizes = [8, 8], strides = [1, 1]} : vector<8x32xbf16> to vector<8x8xbf16>
    %152 = vector.extract_strided_slice %139 {offsets = [0, 16], sizes = [8, 8], strides = [1, 1]} : vector<8x32xbf16> to vector<8x8xbf16>
    %153 = vector.extract_strided_slice %139 {offsets = [0, 24], sizes = [8, 8], strides = [1, 1]} : vector<8x32xbf16> to vector<8x8xbf16>
    %154 = vector.shape_cast %150 : vector<8x8xbf16> to vector<1x8x8xbf16>
    %155 = vector.shape_cast %151 : vector<8x8xbf16> to vector<1x8x8xbf16>
    %156 = vector.shape_cast %152 : vector<8x8xbf16> to vector<1x8x8xbf16>
    %157 = vector.shape_cast %153 : vector<8x8xbf16> to vector<1x8x8xbf16>
    %158 = tpu.concatenate %154, %155, %156, %157 in 0 : vector<1x8x8xbf16>, vector<1x8x8xbf16>, vector<1x8x8xbf16>, vector<1x8x8xbf16> -> vector<4x8x8xbf16>
    %159 = vector.extract_strided_slice %140 {offsets = [0, 0], sizes = [8, 8], strides = [1, 1]} : vector<8x32xbf16> to vector<8x8xbf16>
    %160 = vector.extract_strided_slice %140 {offsets = [0, 8], sizes = [8, 8], strides = [1, 1]} : vector<8x32xbf16> to vector<8x8xbf16>
    %161 = vector.extract_strided_slice %140 {offsets = [0, 16], sizes = [8, 8], strides = [1, 1]} : vector<8x32xbf16> to vector<8x8xbf16>
    %162 = vector.extract_strided_slice %140 {offsets = [0, 24], sizes = [8, 8], strides = [1, 1]} : vector<8x32xbf16> to vector<8x8xbf16>
    %163 = vector.shape_cast %159 : vector<8x8xbf16> to vector<1x8x8xbf16>
    %164 = vector.shape_cast %160 : vector<8x8xbf16> to vector<1x8x8xbf16>
    %165 = vector.shape_cast %161 : vector<8x8xbf16> to vector<1x8x8xbf16>
    %166 = vector.shape_cast %162 : vector<8x8xbf16> to vector<1x8x8xbf16>
    %167 = tpu.concatenate %163, %164, %165, %166 in 0 : vector<1x8x8xbf16>, vector<1x8x8xbf16>, vector<1x8x8xbf16>, vector<1x8x8xbf16> -> vector<4x8x8xbf16>
    "tpu.trace_start"() <{level = 10 : i32, message = "hqd,hkd->hqk"}> : () -> ()
    %cst_51 = arith.constant dense<0.000000e+00> : vector<4x8x8xf32>
    %168 = tpu.matmul %149, %158, %cst_51 {dimension_numbers = #tpu.dot_dimension_numbers<[2], [2], [1], [1], [0, 0, 0, 1, 1, 1], [0], [0]>} : vector<4x8x8xbf16>, vector<4x8x8xbf16>, vector<4x8x8xf32> -> vector<4x8x8xf32>
    "tpu.trace_stop"() : () -> ()
    %169 = vector.shape_cast %8 : vector<8x8xf32> to vector<1x8x8xf32>
    %170 = vector.broadcast %169 : vector<1x8x8xf32> to vector<4x8x8xf32>
    %171 = arith.addf %168, %170 : vector<4x8x8xf32>
    %cst_52 = arith.constant dense<0xFF800000> : vector<4x8xf32>
    %172 = vector.multi_reduction <maximumf>, %171, %cst_52 [2] : vector<4x8x8xf32> to vector<4x8xf32>
    %173 = vector.shape_cast %172 : vector<4x8xf32> to vector<4x8x1xf32>
    %174 = vector.broadcast %173 : vector<4x8x1xf32> to vector<4x8x8xf32>
    %175 = arith.subf %171, %174 : vector<4x8x8xf32>
    %176 = math.exp %175 : vector<4x8x8xf32>
    %cst_53 = arith.constant dense<0.000000e+00> : vector<4x8xf32>
    %177 = vector.multi_reduction <add>, %176, %cst_53 [2] : vector<4x8x8xf32> to vector<4x8xf32>
    %178 = vector.shape_cast %177 : vector<4x8xf32> to vector<4x8x1xf32>
    %179 = tpu.reciprocal %178 {approx = true} : vector<4x8x1xf32> -> vector<4x8x1xf32>
    %180 = vector.broadcast %179 : vector<4x8x1xf32> to vector<4x8x8xf32>
    %181 = arith.mulf %176, %180 : vector<4x8x8xf32>
    %182 = arith.truncf %181 : vector<4x8x8xf32> to vector<4x8x8xbf16>
    "tpu.trace_start"() <{level = 10 : i32, message = "hqk,hkd->hqd"}> : () -> ()
    %cst_54 = arith.constant dense<0.000000e+00> : vector<4x8x8xf32>
    %183 = tpu.matmul %182, %167, %cst_54 {dimension_numbers = #tpu.dot_dimension_numbers<[2], [1], [1], [2], [0, 0, 0, 1, 1, 2], [0], [0]>} : vector<4x8x8xbf16>, vector<4x8x8xbf16>, vector<4x8x8xf32> -> vector<4x8x8xf32>
    "tpu.trace_stop"() : () -> ()
    %184 = vector.extract_strided_slice %183 {offsets = [0, 0, 0], sizes = [1, 8, 8], strides = [1, 1, 1]} : vector<4x8x8xf32> to vector<1x8x8xf32>
    %185 = vector.shape_cast %184 : vector<1x8x8xf32> to vector<8x8xf32>
    %186 = vector.extract_strided_slice %183 {offsets = [1, 0, 0], sizes = [1, 8, 8], strides = [1, 1, 1]} : vector<4x8x8xf32> to vector<1x8x8xf32>
    %187 = vector.shape_cast %186 : vector<1x8x8xf32> to vector<8x8xf32>
    %188 = vector.extract_strided_slice %183 {offsets = [2, 0, 0], sizes = [1, 8, 8], strides = [1, 1, 1]} : vector<4x8x8xf32> to vector<1x8x8xf32>
    %189 = vector.shape_cast %188 : vector<1x8x8xf32> to vector<8x8xf32>
    %190 = vector.extract_strided_slice %183 {offsets = [3, 0, 0], sizes = [1, 8, 8], strides = [1, 1, 1]} : vector<4x8x8xf32> to vector<1x8x8xf32>
    %191 = vector.shape_cast %190 : vector<1x8x8xf32> to vector<8x8xf32>
    %192 = tpu.concatenate %185, %187, %189, %191 in 1 : vector<8x8xf32>, vector<8x8xf32>, vector<8x8xf32>, vector<8x8xf32> -> vector<8x32xf32>
    %193 = arith.truncf %192 : vector<8x32xf32> to vector<8x32xbf16>
    %c0_55 = arith.constant 0 : index
    %c0_56 = arith.constant 0 : index
    %194 = vector.load %arg15[%c0_55, %c0_56] : memref<32x32xbf16, #tpu.memory_space<vmem>>, vector<32x32xbf16>
    %cst_57 = arith.constant dense<0.000000e+00> : vector<8x32xf32>
    %195 = tpu.matmul %193, %194, %cst_57 {dimension_numbers = #tpu.dot_dimension_numbers<[1], [0], [0], [1], [0, 0, 1, 1], [], []>} : vector<8x32xbf16>, vector<32x32xbf16>, vector<8x32xf32> -> vector<8x32xf32>
    %c0_58 = arith.constant 0 : index
    %c0_59 = arith.constant 0 : index
    %196 = vector.load %arg16[%c0_58, %c0_59] : memref<1x32xf32, #tpu.memory_space<vmem>>, vector<1x32xf32>
    %197 = vector.broadcast %196 : vector<1x32xf32> to vector<8x32xf32>
    %198 = arith.addf %195, %197 : vector<8x32xf32>
    %199 = arith.addf %101, %198 : vector<8x32xf32>
    %c2 = arith.constant 2 : index
    %c0_60 = arith.constant 0 : index
    %200 = vector.load %arg5[%c2, %c0_60] : memref<3x32xf32, #tpu.memory_space<vmem>>, vector<1x32xf32>
    %c2_61 = arith.constant 2 : index
    %c0_62 = arith.constant 0 : index
    %201 = vector.load %arg6[%c2_61, %c0_62] : memref<3x32xf32, #tpu.memory_space<vmem>>, vector<1x32xf32>
    %cst_63 = arith.constant dense<0.000000e+00> : vector<8xf32>
    %202 = vector.multi_reduction <add>, %199, %cst_63 [1] : vector<8x32xf32> to vector<8xf32>
    %203 = vector.shape_cast %202 : vector<8xf32> to vector<8x1xf32>
    %cst_64 = arith.constant 3.200000e+01 : f32
    %204 = vector.broadcast %cst_64 : f32 to vector<8x1xf32>
    %205 = arith.divf %203, %204 : vector<8x1xf32>
    %206 = vector.broadcast %205 : vector<8x1xf32> to vector<8x32xf32>
    %207 = arith.subf %199, %206 : vector<8x32xf32>
    %208 = arith.mulf %207, %207 : vector<8x32xf32>
    %cst_65 = arith.constant dense<0.000000e+00> : vector<8xf32>
    %209 = vector.multi_reduction <add>, %208, %cst_65 [1] : vector<8x32xf32> to vector<8xf32>
    %210 = vector.shape_cast %209 : vector<8xf32> to vector<8x1xf32>
    %cst_66 = arith.constant 3.200000e+01 : f32
    %211 = vector.broadcast %cst_66 : f32 to vector<8x1xf32>
    %212 = arith.divf %210, %211 : vector<8x1xf32>
    %213 = vector.broadcast %205 : vector<8x1xf32> to vector<8x32xf32>
    %214 = arith.subf %199, %213 : vector<8x32xf32>
    %cst_67 = arith.constant 9.99999997E-7 : f32
    %215 = vector.broadcast %cst_67 : f32 to vector<8x1xf32>
    %216 = arith.addf %212, %215 : vector<8x1xf32>
    %217 = math.rsqrt %216 : vector<8x1xf32>
    %218 = vector.broadcast %217 : vector<8x1xf32> to vector<8x32xf32>
    %219 = arith.mulf %214, %218 : vector<8x32xf32>
    %220 = vector.broadcast %200 : vector<1x32xf32> to vector<8x32xf32>
    %221 = arith.mulf %219, %220 : vector<8x32xf32>
    %222 = vector.broadcast %201 : vector<1x32xf32> to vector<8x32xf32>
    %223 = arith.addf %221, %222 : vector<8x32xf32>
    %224 = arith.truncf %223 : vector<8x32xf32> to vector<8x32xbf16>
    %c0_68 = arith.constant 0 : index
    %c0_69 = arith.constant 0 : index
    %225 = vector.load %arg17[%c0_68, %c0_69] : memref<32x64xbf16, #tpu.memory_space<vmem>>, vector<32x64xbf16>
    %cst_70 = arith.constant dense<0.000000e+00> : vector<8x64xf32>
    %226 = tpu.matmul %224, %225, %cst_70 {dimension_numbers = #tpu.dot_dimension_numbers<[1], [0], [0], [1], [0, 0, 1, 1], [], []>} : vector<8x32xbf16>, vector<32x64xbf16>, vector<8x64xf32> -> vector<8x64xf32>
    %c0_71 = arith.constant 0 : index
    %c0_72 = arith.constant 0 : index
    %227 = vector.load %arg18[%c0_71, %c0_72] : memref<1x64xf32, #tpu.memory_space<vmem>>, vector<1x64xf32>
    %228 = vector.broadcast %227 : vector<1x64xf32> to vector<8x64xf32>
    %229 = arith.addf %226, %228 : vector<8x64xf32>
    %cst_73 = arith.constant 0.000000e+00 : f32
    %230 = vector.broadcast %cst_73 : f32 to vector<8x64xf32>
    %231 = arith.maximumf %229, %230 : vector<8x64xf32>
    %232 = arith.truncf %231 : vector<8x64xf32> to vector<8x64xbf16>
    %c0_74 = arith.constant 0 : index
    %c0_75 = arith.constant 0 : index
    %233 = vector.load %arg19[%c0_74, %c0_75] : memref<64x32xbf16, #tpu.memory_space<vmem>>, vector<64x32xbf16>
    %cst_76 = arith.constant dense<0.000000e+00> : vector<8x32xf32>
    %234 = tpu.matmul %232, %233, %cst_76 {dimension_numbers = #tpu.dot_dimension_numbers<[1], [0], [0], [1], [0, 0, 1, 1], [], []>} : vector<8x64xbf16>, vector<64x32xbf16>, vector<8x32xf32> -> vector<8x32xf32>
    %c0_77 = arith.constant 0 : index
    %c0_78 = arith.constant 0 : index
    %235 = vector.load %arg20[%c0_77, %c0_78] : memref<1x32xf32, #tpu.memory_space<vmem>>, vector<1x32xf32>
    %236 = vector.broadcast %235 : vector<1x32xf32> to vector<8x32xf32>
    %237 = arith.addf %234, %236 : vector<8x32xf32>
    %238 = arith.addf %199, %237 : vector<8x32xf32>
    %c0_79 = arith.constant 0 : index
    %c0_80 = arith.constant 0 : index
    %c0_81 = arith.constant 0 : index
    %239 = vector.load %arg21[%c0_79, %c0_80, %c0_81] : memref<1x8x32xf32, #tpu.memory_space<vmem>>, vector<1x8x32xf32>
    %240 = vector.shape_cast %239 : vector<1x8x32xf32> to vector<8x32xf32>
    %241 = vector.shape_cast %238 : vector<8x32xf32> to vector<1x8x32xf32>
    tpu.vector_store %arg21[%c0_79, %c0_80, %c0_81], %241 {strides = array<i32>} : memref<1x8x32xf32, #tpu.memory_space<vmem>>, vector<1x8x32xf32>,
    return
  }
  func.func @transform_0(%arg0: i32) -> (i32, i32, i32) {
    %c0_i32 = arith.constant 0 : i32
    %c0_i32_0 = arith.constant 0 : i32
    %c0_i32_1 = arith.constant 0 : i32
    return %arg0, %c0_i32, %c0_i32_0 : i32, i32, i32
  }
  func.func @transform_1(%arg0: i32) -> (i32, i32, i32) {
    %c0_i32 = arith.constant 0 : i32
    %c0_i32_0 = arith.constant 0 : i32
    %c0_i32_1 = arith.constant 0 : i32
    return %arg0, %c0_i32, %c0_i32_0 : i32, i32, i32
  }
  func.func @transform_2(%arg0: i32) -> (i32, i32, i32) {
    %c0_i32 = arith.constant 0 : i32
    %c0_i32_0 = arith.constant 0 : i32
    %c0_i32_1 = arith.constant 0 : i32
    return %arg0, %c0_i32, %c0_i32_0 : i32, i32, i32
  }
  func.func @transform_3(%arg0: i32) -> (i32, i32, i32) {
    %c0_i32 = arith.constant 0 : i32
    %c0_i32_0 = arith.constant 0 : i32
    %c0_i32_1 = arith.constant 0 : i32
    return %arg0, %c0_i32, %c0_i32_0 : i32, i32, i32
  }
  func.func @transform_4(%arg0: i32) -> (i32, i32) {
    %c0_i32 = arith.constant 0 : i32
    %c0_i32_0 = arith.constant 0 : i32
    %c0_i32_1 = arith.constant 0 : i32
    return %c0_i32, %c0_i32_0 : i32, i32
  }
  func.func @transform_5(%arg0: i32) -> (i32, i32) {
    %c0_i32 = arith.constant 0 : i32
    %c0_i32_0 = arith.constant 0 : i32
    %c0_i32_1 = arith.constant 0 : i32
    return %c0_i32, %c0_i32_0 : i32, i32
  }
  func.func @transform_6(%arg0: i32) -> (i32, i32) {
    %c0_i32 = arith.constant 0 : i32
    %c0_i32_0 = arith.constant 0 : i32
    %c0_i32_1 = arith.constant 0 : i32
    return %c0_i32, %c0_i32_0 : i32, i32
  }
  func.func @transform_7(%arg0: i32) -> (i32, i32) {
    %c0_i32 = arith.constant 0 : i32
    %c0_i32_0 = arith.constant 0 : i32
    %c0_i32_1 = arith.constant 0 : i32
    return %c0_i32, %c0_i32_0 : i32, i32
  }
  func.func @transform_8(%arg0: i32) -> (i32, i32) {
    %c0_i32 = arith.constant 0 : i32
    %c0_i32_0 = arith.constant 0 : i32
    %c0_i32_1 = arith.constant 0 : i32
    return %c0_i32, %c0_i32_0 : i32, i32
  }
  func.func @transform_9(%arg0: i32) -> (i32, i32) {
    %c0_i32 = arith.constant 0 : i32
    %c0_i32_0 = arith.constant 0 : i32
    %c0_i32_1 = arith.constant 0 : i32
    return %c0_i32, %c0_i32_0 : i32, i32
  }
  func.func @transform_10(%arg0: i32) -> (i32, i32) {
    %c0_i32 = arith.constant 0 : i32
    %c0_i32_0 = arith.constant 0 : i32
    %c0_i32_1 = arith.constant 0 : i32
    return %c0_i32, %c0_i32_0 : i32, i32
  }
  func.func @transform_11(%arg0: i32) -> (i32, i32) {
    %c0_i32 = arith.constant 0 : i32
    %c0_i32_0 = arith.constant 0 : i32
    %c0_i32_1 = arith.constant 0 : i32
    return %c0_i32, %c0_i32_0 : i32, i32
  }
  func.func @transform_12(%arg0: i32) -> (i32, i32) {
    %c0_i32 = arith.constant 0 : i32
    %c0_i32_0 = arith.constant 0 : i32
    %c0_i32_1 = arith.constant 0 : i32
    return %c0_i32, %c0_i32_0 : i32, i32
  }
  func.func @transform_13(%arg0: i32) -> (i32, i32) {
    %c0_i32 = arith.constant 0 : i32
    %c0_i32_0 = arith.constant 0 : i32
    %c0_i32_1 = arith.constant 0 : i32
    return %c0_i32, %c0_i32_0 : i32, i32
  }
  func.func @transform_14(%arg0: i32) -> (i32, i32) {
    %c0_i32 = arith.constant 0 : i32
    %c0_i32_0 = arith.constant 0 : i32
    %c0_i32_1 = arith.constant 0 : i32
    return %c0_i32, %c0_i32_0 : i32, i32
  }
  func.func @transform_15(%arg0: i32) -> (i32, i32) {
    %c0_i32 = arith.constant 0 : i32
    %c0_i32_0 = arith.constant 0 : i32
    %c0_i32_1 = arith.constant 0 : i32
    return %c0_i32, %c0_i32_0 : i32, i32
  }
  func.func @transform_16(%arg0: i32) -> (i32, i32) {
    %c0_i32 = arith.constant 0 : i32
    %c0_i32_0 = arith.constant 0 : i32
    %c0_i32_1 = arith.constant 0 : i32
    return %c0_i32, %c0_i32_0 : i32, i32
  }
  func.func @transform_17(%arg0: i32) -> (i32, i32) {
    %c0_i32 = arith.constant 0 : i32
    %c0_i32_0 = arith.constant 0 : i32
    %c0_i32_1 = arith.constant 0 : i32
    return %c0_i32, %c0_i32_0 : i32, i32
  }
  func.func @transform_18(%arg0: i32) -> (i32, i32) {
    %c0_i32 = arith.constant 0 : i32
    %c0_i32_0 = arith.constant 0 : i32
    %c0_i32_1 = arith.constant 0 : i32
    return %c0_i32, %c0_i32_0 : i32, i32
  }
  func.func @transform_19(%arg0: i32) -> (i32, i32) {
    %c0_i32 = arith.constant 0 : i32
    %c0_i32_0 = arith.constant 0 : i32
    %c0_i32_1 = arith.constant 0 : i32
    return %c0_i32, %c0_i32_0 : i32, i32
  }
  func.func @transform_20(%arg0: i32) -> (i32, i32, i32) {
    %c0_i32 = arith.constant 0 : i32
    %c0_i32_0 = arith.constant 0 : i32
    %c0_i32_1 = arith.constant 0 : i32
    return %arg0, %c0_i32, %c0_i32_0 : i32, i32, i32
  }
}

</mosaic_0001>

<bundles_post_ra>
// kernel: decoder_block.1
= control target key start
LH: loop header
LB: loop body
LE: loop exit
PB: predicated region body
PF: predicated region fallthrough
CT: control target
= control target key end

     0   :  { %s3899_s0 = inlined_call_operand.vmem [shape: f32[2,8,32], index: 0, kind: input, shape index: {}]   ;;  %s3900_s1 = inlined_call_operand.vmem [shape: f32[2,8,32], index: 1, kind: input, shape index: {}]   ;;  %s3901_s2 = inlined_call_operand.vmem [shape: f32[2,8,8], index: 2, kind: input, shape index: {}]   ;;  %s3902_s3 = inlined_call_operand.vmem [shape: f32[2,8,8], index: 3, kind: input, shape index: {}]   ;;  %s3903_s4 = inlined_call_operand.hbm [shape: f32[3,32], index: 4, kind: input, shape index: {}]   ;;  %s3904_s5 = inlined_call_operand.hbm [shape: f32[3,32], index: 5, kind: input, shape index: {}]   ;;  %s3905_s6 = inlined_call_operand.vmem [shape: bf16[32,96], index: 6, kind: input, shape index: {}]   ;;  %s3906_s7 = inlined_call_operand.vmem [shape: f32[1,96], index: 7, kind: input, shape index: {}]   ;;  %s3907_s8 = inlined_call_operand.vmem [shape: bf16[32,32], index: 8, kind: input, shape index: {}]   ;;  %s3908_s9 = inlined_call_operand.hbm [shape: f32[1,32], index: 9, kind: input, shape index: {}]   ;;  %s3909_s10 = inlined_call_operand.vmem [shape: bf16[32,32], index: 10, kind: input, shape index: {}]   ;;  %s3910_s11 = inlined_call_operand.hbm [shape: f32[1,32], index: 11, kind: input, shape index: {}]   ;;  %s3911_s12 = inlined_call_operand.vmem [shape: bf16[32,64], index: 12, kind: input, shape index: {}]   ;;  %s3912_s13 = inlined_call_operand.hbm [shape: f32[1,64], index: 13, kind: input, shape index: {}]   ;;  %s3913_s14 = inlined_call_operand.vmem [shape: bf16[32,32], index: 14, kind: input, shape index: {}]   ;;  %s3914_s15 = inlined_call_operand.hbm [shape: f32[1,32], index: 15, kind: input, shape index: {}]   ;;  %s3915_s16 = inlined_call_operand.hbm [shape: bf16[32,64], index: 16, kind: input, shape index: {}]   ;;  %s3916_s17 = inlined_call_operand.hbm [shape: f32[1,64], index: 17, kind: input, shape index: {}]   ;;  %s3917_s18 = inlined_call_operand.vmem [shape: bf16[64,32], index: 18, kind: input, shape index: {}]   ;;  %s3918_s19 = inlined_call_operand.hbm [shape: f32[1,32], index: 19, kind: input, shape index: {}]   ;;  %s3919_s20 = inlined_call_operand.hbm [shape: f32[2,8,32], index: 20, kind: output, shape index: {}]  }
   0x1   :  { %3931 = sst [smem:[#allocation30_spill]] %s3899_s0 }
   0x2   :  { %3932 = sst [smem:[#allocation31_spill]] %s3900_s1 }
   0x3   :  { %3933 = sst [smem:[#allocation32_spill]] %s3901_s2 }
   0x4   :  { %3934 = sst [smem:[#allocation33_spill]] %s3902_s3 }
   0x5   :  { %3935 = sst [smem:[#allocation34_spill]] %s3903_s4 }
   0x6   :  { %3936 = sst [smem:[#allocation35_spill]] %s3904_s5 }
   0x7   :  { %3937 = sst [smem:[#allocation36_spill]] %s3908_s9 }
   0x8   :  { %25 = vsyncpa [#allocation3], 0 }
   0x9   :  { %26 = vsyncpa [#allocation6], 0 }
   0xa   :  { %27 = vsyncpa [#allocation9], 0 }
   0xb   :  { %28 = vsyncpa [#allocation12], 0 }
   0xc   :  { %29 = vsyncpa [#allocation15], 0 }
   0xd   :  { %30 = vsyncpa [#allocation4], 0 }
   0xe   :  { %32 = vsyncpa [#allocation4 + $0x1], 0  ;;  %s3408_s1 = smov 0   ;;  %s3410_s22 = smov 0  }
   0xf   :  { %s3412_s23 = smov 0   ;;  %s3414_s24 = smov 0  }
  0x10 LB: > { %3938 = sst [smem:[#allocation24_spill]] %s3267_s1  ;;  %s3429_s2 = sadd.s32 4294967295, %s3279_s24   ;;  %s3279_s24 = sphi %s3414_s24, %s3974_s24   ;;  %s3275_s23 = sphi %s3412_s23, %s3976_s23   ;;  %s3271_s22 = sphi %s3410_s22, %s3978_s22   ;;  %s3267_s1 = sphi %s3408_s1, %s3977_s1  }
  0x11   : > { %3939 = sst [smem:[#allocation25_spill]] %s3275_s23  ;;  %s2475_s25 = sadd.s32 4294967294, %s3279_s24  }
  0x12   : > { %3940 = sst [smem:[#allocation26_spill]] %s3279_s24  ;;  %s3433_s3 = sadd.s32 1, %s3279_s24  }
  0x13   : > { %3941 = sst [smem:[#allocation27_spill]] %s3433_s3  ;;  %s485_s26 = sadd.s32 1, %s3275_s23 }
  0x14   : > { %s482_s27 = ssub.s32 %s3279_s24, %s3433_s3  ;;  %p495_p0 = scmp.ne.s32.totalorder %s3275_s23, %s3271_s22 }
  0x15   : > { %p483_p1 = scmp.eq.s32.totalorder %s482_s27, 0  ;;  %p496_p2 = scmp.eq.s32.totalorder %s3429_s2, 1 }
  0x16   : > { %p501_p3 = scmp.ne.s32.totalorder %s3271_s22, %s3267_s1  ;;  %p502_p4 = scmp.eq.s32.totalorder %s2475_s25, 1 }
  0x17   : > { %s3444_s28 = scalar_select %p483_p1, %s3275_s23, %s485_s26  }
  0x18   : > { %p3446_p5 = por %p496_p2, %p495_p0  ;;  %p3450_p6 = por %p502_p4, %p501_p3 }
  0x19   : > { %3942 = sst [smem:[#allocation28_spill]] %s3444_s28  ;;  %p2476_p7 = scmp.ge.s32.totalorder %s3279_s24, 1 }
  0x1a   : > { %s3943_s4 = scalar_select %p3446_p5, 1, 0 }
  0x1b   : > { %s3944_s29 = scalar_select %p3450_p6, 1, 0 }
  0x1c   : > { %p509_p8 = scmp.lt.s32.totalorder %s3279_s24, 3  ;;  %p3924_p9 = scmp.eq.s32.totalorder %s3429_s2, 0 }
  0x1d   : > { %3945 = sst [smem:[#allocation29_spill]] %s3944_s29  ;;  %s3281_s0 = smov [#allocation5]  }
  0x1e   : > { %p3457_p10 = pnand %p2476_p7, %p509_p8  ;;  %s533_s21 = sshll.u32 %s3281_s0, 4  ;;  %s534_s21 = int_to_ptr.vmem [resolvable:$true] %s533_s21 }
  0x1f   : > { %s3282_s25 = smov [#allocation8]   ;;  %s3283_s28 = smov [#allocation11]  }
  0x20   : > { %s3946_s30 = scalar_select %p3457_p10, 1, 0 }
  0x21   : > { %p2807_p11 = pneg %p3457_p10  ;;  %s567_s26 = sshll.u32 %s3282_s25, 4  ;;  %s568_s26 = int_to_ptr.vmem [resolvable:$true] %s567_s26 }
  0x22   : > { %s595_s23 = sshll.u32 %s3283_s28, 4  ;;  %s2976_s0 = scalar_lea.vmem %s534_s21, 64  ;;  %s3469_s23 = int_to_ptr.vmem [resolvable:$true] %s595_s23 }
  0x23   : > { %p3465_p12 = pnand %p3924_p9, %p2807_p11  ;;  %p2977_p0 = scmp.ne.s32.totalorder %s534_s21, %s2976_s0 }
  0x24   : > { %p2984_p3 = scmp.lt.s32.totalorder %s534_s21, %s534_s21  ;;  %p2985_p4 = scmp.lt.s32.totalorder %s2976_s0, %s2976_s0 }
  0x25   : > { %p3473_p13 = pneg %p3465_p12 }
  0x26   : > { %p2986_p7 = por %p2985_p4, %p2984_p3 }
  0x27   : > { %p2979_p1 = pnand %p2977_p0, %p3473_p13 }
  0x29   : > { %p2980_p2 = pneg %p2979_p1 }
  0x2b   : > { %p2987_p8 = pnand %p2986_p7, %p2980_p2 }
  0x2d   : > { %2990 = shalt.err (!%p2987_p8)
}
  0x2e   : > { %s3949_s5 = sld [smem:[#allocation35_spill]]  ;;  %s3002_s29 = scalar_lea.vmem %s568_s26, 16 }
  0x2f   : > { %p3003_p11 = scmp.ne.s32.totalorder %s568_s26, %s3002_s29  ;;  %s3009_s1 = scalar_lea.vmem %s568_s26, 32 }
  0x30   : > { %p3010_p0 = scmp.lt.s32.totalorder %s568_s26, %s568_s26  ;;  %p3011_p1 = scmp.lt.s32.totalorder %s3009_s1, %s3002_s29 }
  0x31   : > { %p3005_p9 = pnand %p3003_p11, %p3473_p13 }
  0x32   : > { %p3012_p5 = por %p3011_p1, %p3010_p0 }
  0x33   : > { %p3006_p6 = pneg %p3005_p9 }
  0x34   : > { %2813 = dma.hbm_to_vmem [thread:$0]  (!%p3465_p12), %s3949_s5, 64, %s534_s21, [#allocation6]  }
  0x35   : > { %p3013_p10 = pnand %p3012_p5, %p3006_p6 }
  0x37   : > { %3016 = shalt.err (!%p3013_p10)
}
  0x38   : > { %2819 = dma.hbm_to_vmem [thread:$0]  (!%p3465_p12), %s3910_s11, 16, %s568_s26, [#allocation9]  }
  0x39   : > { %s3028_s21 = scalar_lea.vmem %s3469_s23, 16  ;;  %s3035_s1 = scalar_lea.vmem %s3469_s23, 32 }
  0x3a   : > { %p3029_p2 = scmp.ne.s32.totalorder %s3469_s23, %s3028_s21  ;;  %p3036_p5 = scmp.lt.s32.totalorder %s3469_s23, %s3469_s23 }
  0x3b   : > { %p3037_p6 = scmp.lt.s32.totalorder %s3035_s1, %s3028_s21 }
  0x3c   : > { %p3031_p9 = pnand %p3029_p2, %p3473_p13 }
  0x3d   : > { %p3038_p10 = por %p3037_p6, %p3036_p5 }
  0x3e   : > { %p3032_p3 = pneg %p3031_p9 }
  0x40   : > { %p3039_p4 = pnand %p3038_p10, %p3032_p3 }
  0x42   : > { %3042 = shalt.err (!%p3039_p4)
}
  0x43   : > { %2825 = dma.hbm_to_vmem [thread:$0]  (!%p3465_p12), %s3914_s15, 16, %s3469_s23, [#allocation12]  }
  0x44   : > { %s3284_s26 = smov [#allocation14]   ;;  %s3285_s25 = smov [#allocation2]  }
  0x45   : > { %s619_s28 = sshll.u32 %s3284_s26, 4  ;;  %s522_s0 = sshll.u32 %s3285_s25, 4  ;;  %s620_s28 = int_to_ptr.vmem [resolvable:$true] %s619_s28  ;;  %s523_s0 = int_to_ptr.vmem [resolvable:$true] %s522_s0 }
  0x46   : > { %s3054_s5 = scalar_lea.vmem %s620_s28, 16  ;;  %s3061_s21 = scalar_lea.vmem %s620_s28, 32 }
  0x47   : > { %p3055_p7 = scmp.ne.s32.totalorder %s620_s28, %s3054_s5  ;;  %p3062_p0 = scmp.lt.s32.totalorder %s620_s28, %s620_s28 }
  0x48   : > { %p3063_p1 = scmp.lt.s32.totalorder %s3061_s21, %s3054_s5 }
  0x49   : > { %p3057_p8 = pnand %p3055_p7, %p3473_p13 }
  0x4a   : > { %p3064_p2 = por %p3063_p1, %p3062_p0 }
  0x4b   : > { %p3058_p11 = pneg %p3057_p8 }
  0x4d   : > { %p3065_p9 = pnand %p3064_p2, %p3058_p11 }
  0x4f   : > { %3068 = shalt.err (!%p3065_p9)
}
  0x50   : > { %2831 = dma.hbm_to_vmem [thread:$0]  (!%p3465_p12), %s3916_s17, 16, %s620_s28, [#allocation15]  }
  0x51   : > { %s3080_s24 = scalar_lea.vmem %s523_s0, 64  ;;  %p3088_p10 = scmp.lt.s32.totalorder %s523_s0, %s523_s0 }
  0x52   : > { %p3081_p3 = scmp.ne.s32.totalorder %s523_s0, %s3080_s24  ;;  %p3089_p4 = scmp.lt.s32.totalorder %s3080_s24, %s3080_s24 }
  0x54   : > { %p3083_p5 = pnand %p3081_p3, %p3473_p13  ;;  %p3090_p7 = por %p3089_p4, %p3088_p10 }
  0x56   : > { %p3084_p6 = pneg %p3083_p5 }
  0x58   : > { %p3091_p8 = pnand %p3090_p7, %p3084_p6 }
  0x5a   : > { %3094 = shalt.err (!%p3091_p8)
}
  0x5b   : > { %s3950_s26 = sld [smem:[#allocation34_spill]]  ;;  %s3286_s25 = smov [#allocation7]  }
  0x5c   : > { %s553_s28 = sshll.u32 %s3286_s25, 4  ;;  %s3287_s21 = smov [#allocation10]   ;;  %s554_s28 = int_to_ptr.vmem [resolvable:$true] %s553_s28 }
  0x5d   : > { %s581_s1 = sshll.u32 %s3287_s21, 4  ;;  %s3106_s23 = scalar_lea.vmem %s554_s28, 16  ;;  %s582_s1 = int_to_ptr.vmem [resolvable:$true] %s581_s1 }
  0x5e   : > { %p3107_p11 = scmp.ne.s32.totalorder %s554_s28, %s3106_s23  ;;  %s3113_s24 = scalar_lea.vmem %s554_s28, 32 }
  0x5f   : > { %p3114_p2 = scmp.lt.s32.totalorder %s554_s28, %s554_s28  ;;  %p3115_p9 = scmp.lt.s32.totalorder %s3113_s24, %s3106_s23 }
  0x60   : > { %p3109_p0 = pnand %p3107_p11, %p3473_p13 }
  0x61   : > { %2810 = dma.hbm_to_vmem [thread:$0]  (!%p3465_p12), %s3950_s26, 64, %s523_s0, [#allocation3]  }
  0x62   : > { %p3110_p1 = pneg %p3109_p0  ;;  %p3116_p3 = por %p3115_p9, %p3114_p2 }
  0x64   : > { %p3117_p5 = pnand %p3116_p3, %p3110_p1 }
  0x66   : > { %3120 = shalt.err (!%p3117_p5)
}
  0x67   : > { %s3951_s9 = sld [smem:[#allocation36_spill]]  ;;  %s3132_s29 = scalar_lea.vmem %s582_s1, 16 }
  0x68   : > { %p3133_p6 = scmp.ne.s32.totalorder %s582_s1, %s3132_s29  ;;  %s3139_s26 = scalar_lea.vmem %s582_s1, 32 }
  0x69   : > { %p3140_p7 = scmp.lt.s32.totalorder %s582_s1, %s582_s1  ;;  %p3141_p8 = scmp.lt.s32.totalorder %s3139_s26, %s3132_s29 }
  0x6a   : > { %p3135_p10 = pnand %p3133_p6, %p3473_p13 }
  0x6b   : > { %p3142_p11 = por %p3141_p8, %p3140_p7 }
  0x6c   : > { %p3136_p4 = pneg %p3135_p10 }
  0x6d   : > { %2816 = dma.hbm_to_vmem [thread:$0]  (!%p3465_p12), %s3951_s9, 16, %s554_s28, [#allocation6]  }
  0x6e   : > { %p3143_p0 = pnand %p3142_p11, %p3136_p4 }
  0x70   : > { %3146 = shalt.err (!%p3143_p0)
}
  0x71   : > { %2822 = dma.hbm_to_vmem [thread:$0]  (!%p3465_p12), %s3912_s13, 16, %s582_s1, [#allocation9]  }
  0x72   : > { %s3288_s28 = smov [#allocation13]  }
  0x73   : > { %s605_s23 = sshll.u32 %s3288_s28, 4  ;;  %s606_s23 = int_to_ptr.vmem [resolvable:$true] %s605_s23 }
  0x74   : > { %s3158_s24 = scalar_lea.vmem %s606_s23, 256  ;;  %p3166_p3 = scmp.lt.s32.totalorder %s606_s23, %s606_s23 }
  0x75   : > { %p3159_p1 = scmp.ne.s32.totalorder %s606_s23, %s3158_s24  ;;  %p3167_p5 = scmp.lt.s32.totalorder %s3158_s24, %s3158_s24 }
  0x77   : > { %p3161_p2 = pnand %p3159_p1, %p3473_p13  ;;  %p3168_p6 = por %p3167_p5, %p3166_p3 }
  0x79   : > { %p3162_p9 = pneg %p3161_p2 }
  0x7b   : > { %p3169_p10 = pnand %p3168_p6, %p3162_p9 }
  0x7d   : > { %3172 = shalt.err (!%p3169_p10)
}
  0x7e   : > { %s3289_s5 = smov 64   ;;  %s3290_s0 = smov 4  }
  0x7f   : > { %2828 = dma.hbm_to_vmem [thread:$0]  (!%p3465_p12), %s3915_s16, 256, %s606_s23, [#allocation12], %s3289_s5, %s3289_s5, %s3290_s0  }
  0x80   : > { %s3291_s26 = smov [#allocation16]  }
  0x81   : > { %s633_s25 = sshll.u32 %s3291_s26, 4  ;;  %s634_s25 = int_to_ptr.vmem [resolvable:$true] %s633_s25 }
  0x82   : > { %s3184_s21 = scalar_lea.vmem %s634_s25, 16  ;;  %s3191_s28 = scalar_lea.vmem %s634_s25, 32 }
  0x83   : > { %p3185_p4 = scmp.ne.s32.totalorder %s634_s25, %s3184_s21  ;;  %p3192_p11 = scmp.lt.s32.totalorder %s634_s25, %s634_s25 }
  0x84   : > { %p3193_p0 = scmp.lt.s32.totalorder %s3191_s28, %s3184_s21 }
  0x85   : > { %p3187_p7 = pnand %p3185_p4, %p3473_p13 }
  0x86   : > { %p3194_p1 = por %p3193_p0, %p3192_p11 }
  0x87   : > { %p3188_p8 = pneg %p3187_p7 }
  0x89   : > { %p3195_p2 = pnand %p3194_p1, %p3188_p8 }
  0x8b   : > { %3198 = shalt.err (!%p3195_p2)
}
  0x8c   : > { %2834 = dma.hbm_to_vmem [thread:$0]  (!%p3465_p12), %s3918_s19, 16, %s634_s25, [#allocation15]  }
  0x8d   : > { %p3952_p9 = scmp.ne.s32.totalorder %s3946_s30, 0 }
  0x8e   : > { %p3953_p3 = scmp.eq.s32.totalorder (!%p3952_p9), %s3429_s2, 0 }
  0x8f   : > { %674 = sbr.rel (%p3952_p9) target bundleno = 4306 (0x10d2), region = 100 }
  0x94   : > { %3242 = dma.done.wait (%p3953_p3), [#allocation3], 64   ;;  %p3954_p13 = pmov %p3953_p3 }
  0x95   : > { %p3955_p5 = pmov %p3953_p3 }
  0x96   : > { %3244 = vsyncadd (%p3954_p13), [#allocation3], 4294967232 }
  0x97   : > { %3246 = dma.done.wait (%p3955_p5), [#allocation6], 80   ;;  %p3956_p6 = pmov %p3953_p3 }
  0x98   : > { %p3957_p10 = pmov %p3953_p3 }
  0x99   : > { %3248 = vsyncadd (%p3956_p6), [#allocation6], 4294967216 }
  0x9a   : > { %3250 = dma.done.wait (%p3957_p10), [#allocation9], 32   ;;  %p3958_p12 = pmov %p3953_p3 }
  0x9b   : > { %p3959_p4 = pmov %p3953_p3 }
  0x9c   : > { %3252 = vsyncadd (%p3958_p12), [#allocation9], 4294967264 }
  0x9d   : > { %3254 = dma.done.wait (%p3959_p4), [#allocation12], 272   ;;  %p3960_p7 = pmov %p3953_p3 }
  0x9e   : > { %p3961_p8 = pmov %p3953_p3 }
  0x9f   : > { %3256 = vsyncadd (%p3960_p7), [#allocation12], 4294967024 }
  0xa0   : > { %3258 = dma.done.wait (%p3961_p8), [#allocation15], 32   ;;  %p3962_p11 = pmov %p3953_p3 }
  0xa1   : > { %p775_p0 = scmp.lt.s32.totalorder %s3429_s2, 1  ;;  %s3963_s23 = sld [smem:[#allocation30_spill]]  ;;  %vm799_vm0 = vcmask 261120   ;;  %v2911_v7 = vld [vmem:[%s3905_s6 + $0x8] sm:$0xff]   ;;  %v3292_v8 = vmov 0.0   ;;  %vm3293_vm1 = vmmov 0  }
  0xa2   : > { %3260 = vsyncadd (%p3962_p11), [#allocation15], 4294967264  ;;  %2613 = vmatprep.subr.bf16.mxu1 %v3292_v8  ;;  %2617 = vmatprep.mubr.msk.bf16.mxu1 %vm3293_vm1, %v3292_v8  ;;  %v2912_v9 = vld [vmem:[%s3905_s6] sm:$0xff]   ;;  %s3294_s28 = smov 104   ;;  %s3295_s24 = smov 120   ;;  %vm901_vm2 = vcmask 64512  }
  0xa3   : > { %s776_s9 = scalar_select %p775_p0, %s3429_s2, 1  ;;  %2614 = vmatpush3.bf16.msra.mxu1 %v2911_v7  ;;  %2627 = vmatprep.subr.bf16.mxu0 %v3292_v8  ;;  %v2502_v14 = vld [vmem:[#allocation2] ss:$0 sm:$0xff]  ;;  %v2503_v16 = vld [vmem:[#allocation5] ss:$0 sm:$0xff]  ;;  %vm1145_vm3 = vcmask 1043456  }
  0xa4   : > { %2615 = vmatprep.subr.bf16.mxu1 %v3292_v8  ;;  %2629 = vmatprep.mubr.msk.bf16.mxu0 %vm3293_vm1, %v3292_v8  ;;  %v2504_v20 = vld [vmem:[%s3906_s7] ss:$0 sm:$0xff]  ;;  %s3297_s30 = smov 96   ;;  %s3298_s29 = smov 64   ;;  %vm1346_vm4 = vcmask 130048   ;;  %vm1348_vm5 = vcmask 195584  }
  0xa5   : > { %s3570_s3 = sshll.u32 %s776_s9, 3  ;;  %s3296_s9 = smov 112   ;;  %vm2232_vm6 = vcmask 523264  }
  0xa6   : > { %s3299_s27 = smov 8   ;;  %s3965_s25 = sld [smem:[#allocation31_spill]] }
  0xa7   : > { %s778_s5 = scalar_lea.vmem %s3963_s23, %s3570_s3  ;;  %2616 = vmatpush3.bf16.msra.mxu1 %v2912_v9  ;;  %s3930_s23 = smov 16  }
  0xa8   : > { %v3576_v0 = vld [vmem:[%s778_s5] sm:$0xff]  ;;  %2621 = vmatprep.subr.bf16.mxu1 %v3292_v8  ;;  %s3964_s5 = sld [smem:[#allocation32_spill]]  ;;  %p3969_p2 = scmp.ne.s32.totalorder %s3943_s4, 0 }
  0xa9   : > { %v800_v1 = vsel %vm799_vm0, %v3576_v0, 0.0  ;;  %s3302_s26 = smov [#allocation17]  }
  0xaa   : > { %801 = vadd.xlane.f32.xlu0 %v800_v1 }
  0xac   : > { %s782_s21 = scalar_lea.vmem %s3965_s25, %s3570_s3 }
  0xae   : > { %s786_s0 = scalar_lea.vmem %s3964_s5, %s3570_s3  ;;  %s3929_s5 = smov 24  }
  0xaf   : > { %v795_v38 = vld [vmem:[%s786_s0] sm:$0xff]  ;;  %s3968_s0 = smov 24  }
 0x133   : > { %v802_v2 = vpop.xlane.xlu0 %801 }
 0x134   : > { %v804_v3 = vmul.f32 0.03125, %v802_v2 }
 0x136   : > { %v805_v4 = vsub.f32 %v3576_v0, %v804_v3 }
 0x138   : > { %v806_v5 = vmul.f32 %v805_v4, %v805_v4 }
 0x13a   : > { %v807_v6 = vsel %vm799_vm0, %v806_v5, 0.0 }
 0x13b   : > { %808 = vadd.xlane.f32.xlu0 %v807_v6 }
 0x1c4   : > { %v809_v10 = vpop.xlane.xlu0 %808 }
 0x1c5   : > { %v810_v11 = vmul.f32 0.03125, %v809_v10 }
 0x1c7   : > { %v811_v12 = vadd.f32 1e-06, %v810_v11 }
 0x1c9   : > { %2927 = vrsqrt.f32 %v811_v12 }
 0x1d6   : > { %v2928_v13 = vpop.eup %2927 }
 0x1d7   : > { %v813_v15 = vmul.f32 %v2928_v13, %v805_v4 }
 0x1d9   : > { %v818_v17 = vmul.f32 %v2502_v14, %v813_v15 }
 0x1db   : > { %v823_v18 = vadd.f32 %v2503_v16, %v818_v17 }
 0x1dd   : > { %v824_v19 = vpack.c.bf16 %v823_v18, %v823_v18 }
 0x1df   : > { %2618 = vmatmul.mubr.msk.bf16.vlgmr.msra.gmra.mxu1 %vm799_vm0, %v824_v19 }
 0x1e0   : > { %2623 = vmatprep.mubr.msk.bf16.mxu1 %vm3293_vm1, %v3292_v8 }
 0x29f   : > { %v885_v21 = vpop.f32.mrf.mxu1 }
 0x2a0   : > { %v886_v22 = vadd.f32 %v2504_v20, %v885_v21 }
 0x2a1   : > { %v2619_v23 = vpop.f32.mrf.mxu1 }
 0x2a2   : > { %v3602_v24 = vpack.c.bf16 %v886_v22, %v886_v22 }
 0x2a3   : > { %v888_v25 = vpop.f32.mrf.mxu1 }
 0x2a4   : > { %897 = vrot.lane.b32.xlu0 %v3602_v24, %s3294_s28  ;;  %893 = vrot.lane.b32.xlu1 %v3602_v24, %s3295_s24 }
 0x2a5   : > { %v2620_v26 = vpop.f32.mrf.mxu1 }
 0x2a8   : > { %895 = vrot.lane.b32.xlu1 %v3602_v24, %s3296_s9 }
 0x2ac   : > { %899 = vrot.lane.b32.xlu1 %v3602_v24, %s3297_s30 }
 0x316   : > { %v3612_v27 = vpop.permute.xlu1 %893  ;;  %v3620_v29 = vpop.permute.xlu0 %897 }
 0x317   : > { %948 = vrot.lane.b32.xlu1 %v3612_v27, %s3297_s30 }
 0x31a   : > { %v3616_v28 = vpop.permute.xlu1 %895 }
 0x31b   : > { %996 = vrot.lane.b32.xlu1 %v3616_v28, %s3297_s30 }
 0x31e   : > { %v900_v30 = vpop.permute.xlu1 %899 }
 0x31f   : > { %v906_v31 = vsel %vm901_vm2, %v900_v30, 0  ;;  %1044 = vrot.lane.b32.xlu1 %v3620_v29, %s3297_s30 }
 0x320   : > { %2622 = vmatpush3.bf16.xpose.msra.mxu1 %v906_v31 }
 0x321   : > { %2633 = vmatprep.subr.bf16.mxu1 %v3292_v8 }
 0x327   : > { %2624 = vmatmul.mubr.msk.bf16.vlgmr.msra.gmra.mxu1 %vm901_vm2, %v3602_v24 }
 0x328   : > { %2635 = vmatprep.mubr.msk.bf16.mxu1 %vm3293_vm1, %v3292_v8 }
 0x389   : > { %v949_v32 = vpop.permute.xlu1 %948 }
 0x38a   : > { %v954_v33 = vsel %vm901_vm2, %v949_v32, 0 }
 0x38b   : > { %2628 = vmatpush3.bf16.xpose.msra.mxu0 %v954_v33 }
 0x38c   : > { %2639 = vmatprep.subr.bf16.mxu0 %v3292_v8 }
 0x38d   : > { %v997_v34 = vpop.permute.xlu1 %996 }
 0x38e   : > { %v1002_v35 = vsel %vm901_vm2, %v997_v34, 0 }
 0x38f   : > { %2634 = vmatpush3.bf16.xpose.msra.mxu1 %v1002_v35 }
 0x390   : > { %2645 = vmatprep.subr.bf16.mxu1 %v3292_v8 }
 0x391   : > { %v1045_v36 = vpop.permute.xlu1 %1044 }
 0x392   : > { %v1050_v37 = vsel %vm901_vm2, %v1045_v36, 0  ;;  %2630 = vmatmul.mubr.msk.bf16.vlgmr.msra.gmra.mxu0 %vm901_vm2, %v3612_v27 }
 0x393   : > { %2640 = vmatpush3.bf16.xpose.msra.mxu0 %v1050_v37  ;;  %2641 = vmatprep.mubr.msk.bf16.mxu0 %vm3293_vm1, %v3292_v8 }
 0x394   : > { %2651 = vmatprep.subr.bf16.mxu0 %v3292_v8 }
 0x396   : > { %2636 = vmatmul.mubr.msk.bf16.vlgmr.msra.gmra.mxu1 %vm901_vm2, %v3616_v28 }
 0x397   : > { %2647 = vmatprep.mubr.msk.bf16.mxu1 %vm3293_vm1, %v3292_v8 }
 0x39a   : > { %2642 = vmatmul.mubr.msk.bf16.vlgmr.msra.gmra.mxu0 %vm901_vm2, %v3620_v29 }
 0x39b   : > { %2653 = vmatprep.mubr.msk.bf16.mxu0 %vm3293_vm1, %v3292_v8 }
 0x3e7   : > { %v942_v39 = vpop.f32.mrf.mxu1 }
 0x3e8   : > { %v943_v40 = vadd.f32 %v942_v39, %v795_v38 }
 0x3e9   : > { %v2625_v41 = vpop.f32.mrf.mxu1 }
 0x3ea   : > { %v1092_v42 = vsel %vm901_vm2, %v943_v40, -inf }
 0x3eb   : > { %1093 = vmax.xlane.f32.xlu1 %v1092_v42  ;;  %v945_v43 = vpop.f32.mrf.mxu1 }
 0x3ed   : > { %v2626_v44 = vpop.f32.mrf.mxu1 }
 0x452   : > { %v990_v45 = vpop.f32.mrf.mxu0 }
 0x453   : > { %v991_v46 = vadd.f32 %v990_v45, %v795_v38 }
 0x454   : > { %v2631_v47 = vpop.f32.mrf.mxu0 }
 0x455   : > { %v1095_v48 = vsel %vm901_vm2, %v991_v46, -inf }
 0x456   : > { %1096 = vmax.xlane.f32.xlu0 %v1095_v48  ;;  %v993_v49 = vpop.f32.mrf.mxu0  ;;  %v1038_v50 = vpop.f32.mrf.mxu1 }
 0x457   : > { %v1039_v51 = vadd.f32 %v1038_v50, %v795_v38  ;;  %v2913_v49 = vld [vmem:[%s3907_s8 + $0x8] sm:$0xff]   ;;  %v2914_v50 = vld [vmem:[%s3907_s8] sm:$0xff]  }
 0x458   : > { %v2632_v52 = vpop.f32.mrf.mxu0  ;;  %v2637_v53 = vpop.f32.mrf.mxu1 }
 0x459   : > { %v1098_v54 = vsel %vm901_vm2, %v1039_v51, -inf }
 0x45a   : > { %v1086_v55 = vpop.f32.mrf.mxu0  ;;  %1099 = vmax.xlane.f32.xlu1 %v1098_v54  ;;  %v1041_v56 = vpop.f32.mrf.mxu1 }
 0x45b   : > { %v1087_v57 = vadd.f32 %v1086_v55, %v795_v38 }
 0x45c   : > { %v2638_v58 = vpop.f32.mrf.mxu1  ;;  %v2643_v59 = vpop.f32.mrf.mxu0 }
 0x45d   : > { %v1101_v60 = vsel %vm901_vm2, %v1087_v57, -inf }
 0x45e   : > { %1102 = vmax.xlane.f32.xlu0 %v1101_v60  ;;  %v1089_v61 = vpop.f32.mrf.mxu0 }
 0x460   : > { %v2644_v62 = vpop.f32.mrf.mxu0 }
 0x46b   : > { %1140 = vrot.lane.b32.xlu1 %v3602_v24, %s3298_s29 }
 0x474   : > { %v1094_v63 = vpop.xlane.xlu1 %1093 }
 0x475   : > { %v1104_v1 = vsub.f32 %v943_v40, %v1094_v63 }
 0x477   : > { %v1108_v2 = vmul.f32 1.442695, %v1104_v1 }
 0x479   : > { %2929 = vpow2.f32 %v1108_v2 }
 0x486   : > { %v2930_v3 = vpop.eup %2929 }
 0x487   : > { %v1116_v4 = vsel %vm901_vm2, %v2930_v3, 0.0 }
 0x48f   : > { %1117 = vadd.xlane.f32.xlu1 %v1116_v4 }
 0x4df   : > { %v1097_v5 = vpop.xlane.xlu0 %1096 }
 0x4e0   : > { %v1105_v6 = vsub.f32 %v991_v46, %v1097_v5 }
 0x4e2   : > { %v1110_v7 = vmul.f32 1.442695, %v1105_v6 }
 0x4e3   : > { %v1100_v9 = vpop.xlane.xlu1 %1099 }
 0x4e4   : > { %2931 = vpow2.f32 %v1110_v7  ;;  %v1106_v10 = vsub.f32 %v1039_v51, %v1100_v9  ;;  %v2516_v7 = vld [vmem:[#allocation7] ss:$0 sm:$0xff] }
 0x4e6   : > { %v1112_v11 = vmul.f32 1.442695, %v1106_v10 }
 0x4e7   : > { %v1103_v12 = vpop.xlane.xlu0 %1102  ;;  %v1141_v13 = vpop.permute.xlu1 %1140 }
 0x4e8   : > { %2933 = vpow2.f32 %v1112_v11  ;;  %v1107_v14 = vsub.f32 %v1087_v57, %v1103_v12  ;;  %v1147_v15 = vsel %vm1145_vm3, %v1141_v13, 0 }
 0x4e9   : > { %2646 = vmatpush3.bf16.msra.mxu1 %v1147_v15 }
 0x4ea   : > { %v1114_v16 = vmul.f32 1.442695, %v1107_v14  ;;  %2657 = vmatprep.subr.bf16.mxu1 %v3292_v8 }
 0x4ec   : > { %2935 = vpow2.f32 %v1114_v16 }
 0x4f1   : > { %v2932_v17 = vpop.eup %2931 }
 0x4f2   : > { %v1119_v18 = vsel %vm901_vm2, %v2932_v17, 0.0 }
 0x4f3   : > { %1120 = vadd.xlane.f32.xlu0 %v1119_v18 }
 0x4f5   : > { %v2934_v19 = vpop.eup %2933 }
 0x4f6   : > { %v1122_v20 = vsel %vm901_vm2, %v2934_v19, 0.0 }
 0x4f7   : > { %1123 = vadd.xlane.f32.xlu1 %v1122_v20 }
 0x4f9   : > { %v2936_v21 = vpop.eup %2935 }
 0x4fa   : > { %v1125_v22 = vsel %vm901_vm2, %v2936_v21, 0.0 }
 0x4fb   : > { %1126 = vadd.xlane.f32.xlu0 %v1125_v22  ;;  %v2916_v22 = vld [vmem:[%s3911_s12] sm:$0xff]  }
 0x508   : > { %1237 = vrot.lane.b32.xlu1 %v3616_v28, %s3298_s29 }
 0x50c   : > { %1285 = vrot.lane.b32.xlu1 %v3620_v29, %s3298_s29 }
 0x511   : > { %1189 = vrot.lane.b32.xlu0 %v3612_v27, %s3298_s29 }
 0x518   : > { %v1118_v23 = vpop.xlane.xlu1 %1117 }
 0x519   : > { %2937 = vrcp.f32 %v1118_v23 }
 0x526   : > { %v2938_v24 = vpop.eup %2937 }
 0x527   : > { %v1132_v25 = vmul.f32 %v2938_v24, %v2930_v3  ;;  %v2917_v24 = vld [vmem:[%s3909_s10 + $0x8] sm:$0xff]  }
 0x529   : > { %v1136_v26 = vpack.c.bf16 %v1132_v25, %v1132_v25  ;;  %v2918_v25 = vld [vmem:[%s3909_s10] sm:$0xff]  }
 0x52b   : > { %2648 = vmatmul.mubr.msk.bf16.vlgmr.msra.gmra.mxu1 %vm901_vm2, %v1136_v26 }
 0x52c   : > { %2659 = vmatprep.mubr.msk.bf16.mxu1 %vm3293_vm1, %v3292_v8 }
 0x57c   : > { %v1121_v30 = vpop.xlane.xlu0 %1120 }
 0x57d   : > { %2939 = vrcp.f32 %v1121_v30 }
 0x580   : > { %v1124_v31 = vpop.xlane.xlu1 %1123 }
 0x581   : > { %2941 = vrcp.f32 %v1124_v31 }
 0x584   : > { %v1127_v28 = vpop.xlane.xlu0 %1126  ;;  %v1238_v32 = vpop.permute.xlu1 %1237 }
 0x585   : > { %2943 = vrcp.f32 %v1127_v28  ;;  %v1243_v29 = vsel %vm1145_vm3, %v1238_v32, 0  ;;  %v2520_v32 = vld [vmem:[#allocation2 + $0x1] ss:$0 sm:$0xff] }
 0x586   : > { %2658 = vmatpush3.bf16.msra.mxu1 %v1243_v29 }
 0x587   : > { %2669 = vmatprep.subr.bf16.mxu1 %v3292_v8 }
 0x588   : > { %v1190_v27 = vpop.permute.xlu0 %1189  ;;  %v1286_v36 = vpop.permute.xlu1 %1285 }
 0x589   : > { %v1195_v33 = vsel %vm1145_vm3, %v1190_v27, 0  ;;  %v1291_v39 = vsel %vm1145_vm3, %v1286_v36, 0  ;;  %v2521_v27 = vld [vmem:[#allocation5 + $0x1] ss:$0 sm:$0xff]  ;;  %v2526_v36 = vld [vmem:[#allocation10] ss:$0 sm:$0xff] }
 0x58a   : > { %v2940_v34 = vpop.eup %2939  ;;  %2652 = vmatpush3.bf16.msra.mxu0 %v1195_v33 }
 0x58b   : > { %2663 = vmatprep.subr.bf16.mxu0 %v3292_v8  ;;  %v1133_v35 = vmul.f32 %v2940_v34, %v2932_v17 }
 0x58d   : > { %v1137_v37 = vpack.c.bf16 %v1133_v35, %v1133_v35 }
 0x58e   : > { %v2942_v38 = vpop.eup %2941 }
 0x58f   : > { %2654 = vmatmul.mubr.msk.bf16.vlgmr.msra.gmra.mxu0 %vm901_vm2, %v1137_v37  ;;  %v1134_v40 = vmul.f32 %v2942_v38, %v2934_v19 }
 0x590   : > { %2664 = vmatpush3.bf16.msra.mxu0 %v1291_v39  ;;  %2665 = vmatprep.mubr.msk.bf16.mxu0 %vm3293_vm1, %v3292_v8 }
 0x591   : > { %v1138_v41 = vpack.c.bf16 %v1134_v40, %v1134_v40  ;;  %2677 = vmatprep.subr.bf16.mxu0 %v3292_v8 }
 0x592   : > { %v2944_v42 = vpop.eup %2943 }
 0x593   : > { %2660 = vmatmul.mubr.msk.bf16.vlgmr.msra.gmra.mxu1 %vm901_vm2, %v1138_v41  ;;  %v1135_v43 = vmul.f32 %v2944_v42, %v2936_v21  ;;  %v2915_v21 = vld [vmem:[%s3911_s12 + $0x8] sm:$0xff]  }
 0x594   : > { %2673 = vmatprep.mubr.msk.bf16.mxu1 %vm3293_vm1, %v3292_v8  ;;  %2670 = vmatpush3.bf16.msra.mxu1 %v2913_v49 }
 0x595   : > { %v1139_v44 = vpack.c.bf16 %v1135_v43, %v1135_v43  ;;  %2671 = vmatprep.subr.bf16.mxu1 %v3292_v8 }
 0x597   : > { %2666 = vmatmul.mubr.msk.bf16.vlgmr.msra.gmra.mxu0 %vm901_vm2, %v1139_v44 }
 0x598   : > { %2681 = vmatprep.mubr.msk.bf16.mxu0 %vm3293_vm1, %v3292_v8  ;;  %2672 = vmatpush3.bf16.msra.mxu1 %v2914_v50 }
 0x599   : > { %2685 = vmatprep.subr.bf16.mxu1 %v3292_v8  ;;  %2678 = vmatpush3.bf16.msra.mxu0 %v2917_v24 }
 0x59a   : > { %2679 = vmatprep.subr.bf16.mxu0 %v3292_v8 }
 0x59d   : > { %2680 = vmatpush3.bf16.msra.mxu0 %v2918_v25 }
 0x59e   : > { %2693 = vmatprep.subr.bf16.mxu0 %v3292_v8 }
 0x5eb   : > { %v1183_v45 = vpop.f32.mrf.mxu1 }
 0x5ed   : > { %v2649_v46 = vpop.f32.mrf.mxu1 }
 0x5ee   : > { %v2522_v46 = vld [vmem:[#allocation8] ss:$0 sm:$0xff] }
 0x5ef   : > { %v1186_v47 = vpop.f32.mrf.mxu1 }
 0x5f1   : > { %v2650_v48 = vpop.f32.mrf.mxu1 }
 0x64f   : > { %v1231_v51 = vpop.f32.mrf.mxu0 }
 0x650   : > { %1334 = vrot.lane.b32.xlu0 %v1231_v51, %s3299_s27 }
 0x651   : > { %v2655_v52 = vpop.f32.mrf.mxu0 }
 0x653   : > { %v1234_v53 = vpop.f32.mrf.mxu0  ;;  %v1279_v54 = vpop.f32.mrf.mxu1 }
 0x654   : > { %1338 = vrot.lane.b32.xlu1 %v1279_v54, %s3930_s23 }
 0x655   : > { %v2656_v55 = vpop.f32.mrf.mxu0  ;;  %v2661_v56 = vpop.f32.mrf.mxu1 }
 0x657   : > { %v1282_v57 = vpop.f32.mrf.mxu1  ;;  %v1327_v58 = vpop.f32.mrf.mxu0 }
 0x658   : > { %1342 = vrot.lane.b32.xlu0 %v1327_v58, %s3929_s5  ;;  %s2555_s5 = sshll.u32 %s3429_s2, 7 }
 0x659   : > { %v2662_v59 = vpop.f32.mrf.mxu1  ;;  %v2667_v60 = vpop.f32.mrf.mxu0  ;;  %s3857_s29 = scalar_lea.hbm %s3919_s20, %s2555_s5 }
 0x65b   : > { %v1330_v61 = vpop.f32.mrf.mxu0 }
 0x65d   : > { %v2668_v62 = vpop.f32.mrf.mxu0 }
 0x6c2   : > { %v1335_v63 = vpop.permute.xlu0 %1334 }
 0x6c3   : > { %v1345_v2 = vsel %vm901_vm2, %v1183_v45, %v1335_v63 }
 0x6c6   : > { %v1339_v1 = vpop.permute.xlu1 %1338 }
 0x6c7   : > { %v1347_v3 = vsel %vm1346_vm4, %v1345_v2, %v1339_v1 }
 0x6ca   : > { %v1343_v4 = vpop.permute.xlu0 %1342 }
 0x6cb   : > { %v1349_v5 = vsel %vm1348_vm5, %v1347_v3, %v1343_v4 }
 0x6cc   : > { %v1350_v6 = vpack.c.bf16 %v1349_v5, %v1349_v5 }
 0x6ce   : > { %2674 = vmatmul.mubr.msk.bf16.vlgmr.msra.gmra.mxu1 %vm799_vm0, %v1350_v6 }
 0x6cf   : > { %2689 = vmatprep.mubr.msk.bf16.mxu1 %vm3293_vm1, %v3292_v8  ;;  %2686 = vmatpush3.bf16.msra.mxu1 %v2915_v21 }
 0x6d0   : > { %2687 = vmatprep.subr.bf16.mxu1 %v3292_v8 }
 0x6d3   : > { %2688 = vmatpush3.bf16.msra.mxu1 %v2916_v22 }
 0x6d4   : > { %2699 = vmatprep.subr.bf16.mxu1 %v3292_v8 }
 0x78e   : > { %v1411_v9 = vpop.f32.mrf.mxu1 }
 0x78f   : > { %v1412_v10 = vadd.f32 %v2516_v7, %v1411_v9 }
 0x790   : > { %v2675_v11 = vpop.f32.mrf.mxu1 }
 0x791   : > { %v3706_v12 = vadd.f32 %v1412_v10, %v3576_v0  ;;  %v793_v0 = vld [vmem:[%s782_s21] sm:$0xff]  ;;  %s3967_s21 = smov 16  }
 0x792   : > { %v1414_v13 = vpop.f32.mrf.mxu1  ;;  %v794_v23 = vpack.c.bf16 %v793_v0, %v793_v0 }
 0x793   : > { %v1420_v14 = vsel %vm799_vm0, %v3706_v12, 0.0 }
 0x794   : > { %1421 = vadd.xlane.f32.xlu1 %v1420_v14  ;;  %v2676_v15 = vpop.f32.mrf.mxu1  ;;  %2690 = vmatmul.mubr.msk.bf16.vlgmr.msra.gmra.mxu1 %vm799_vm0, %v794_v23 }
 0x795   : > { %2701 = vmatprep.mubr.msk.bf16.mxu1 %vm3293_vm1, %v3292_v8 }
 0x81d   : > { %v1422_v16 = vpop.xlane.xlu1 %1421 }
 0x81e   : > { %v1423_v17 = vmul.f32 0.03125, %v1422_v16 }
 0x820   : > { %v1424_v18 = vsub.f32 %v3706_v12, %v1423_v17 }
 0x822   : > { %v1425_v19 = vmul.f32 %v1424_v18, %v1424_v18 }
 0x824   : > { %v1426_v20 = vsel %vm799_vm0, %v1425_v19, 0.0 }
 0x825   : > { %1427 = vadd.xlane.f32.xlu0 %v1426_v20 }
 0x854   : > { %v1571_v37 = vpop.f32.mrf.mxu1 }
 0x855   : > { %v1572_v38 = vadd.f32 %v2526_v36, %v1571_v37 }
 0x856   : > { %v2691_v39 = vpop.f32.mrf.mxu1 }
 0x857   : > { %v3738_v40 = vpack.c.bf16 %v1572_v38, %v1572_v38 }
 0x858   : > { %v1574_v41 = vpop.f32.mrf.mxu1 }
 0x859   : > { %1586 = vrot.lane.b32.xlu0 %v3738_v40, %s3295_s24  ;;  %v1596_v42 = vsel %vm901_vm2, %v3738_v40, 0  ;;  %1588 = vrot.lane.b32.xlu1 %v3738_v40, %s3296_s9 }
 0x85a   : > { %v2692_v43 = vpop.f32.mrf.mxu1 }
 0x85d   : > { %1590 = vrot.lane.b32.xlu0 %v3738_v40, %s3294_s28 }
 0x8ae   : > { %v1428_v26 = vpop.xlane.xlu0 %1427 }
 0x8af   : > { %v1429_v30 = vmul.f32 0.03125, %v1428_v26 }
 0x8b1   : > { %v1430_v31 = vadd.f32 1e-06, %v1429_v30 }
 0x8b3   : > { %2945 = vrsqrt.f32 %v1430_v31 }
 0x8c0   : > { %v2946_v28 = vpop.eup %2945 }
 0x8c1   : > { %v1432_v29 = vmul.f32 %v2946_v28, %v1424_v18 }
 0x8c3   : > { %v1437_v33 = vmul.f32 %v2520_v32, %v1432_v29 }
 0x8c5   : > { %v1442_v34 = vadd.f32 %v2521_v27, %v1437_v33 }
 0x8c7   : > { %v1443_v35 = vpack.c.bf16 %v1442_v34, %v1442_v34 }
 0x8c9   : > { %2682 = vmatmul.mubr.msk.bf16.vlgmr.msra.gmra.mxu0 %vm799_vm0, %v1443_v35 }
 0x8ca   : > { %2695 = vmatprep.mubr.msk.bf16.mxu0 %vm3293_vm1, %v3292_v8  ;;  %2694 = vmatpush3.bf16.xpose.msra.mxu0 %v1596_v42 }
 0x8cb   : > { %2705 = vmatprep.subr.bf16.mxu0 %v3292_v8  ;;  %v1587_v44 = vpop.permute.xlu0 %1586  ;;  %v3751_v49 = vpop.permute.xlu1 %1588 }
 0x8cc   : > { %v1642_v45 = vsel %vm901_vm2, %v1587_v44, 0  ;;  %v1688_v53 = vsel %vm901_vm2, %v3751_v49, 0 }
 0x8cd   : > { %2700 = vmatpush3.bf16.xpose.msra.mxu1 %v1642_v45 }
 0x8ce   : > { %2711 = vmatprep.subr.bf16.mxu1 %v3292_v8 }
 0x8cf   : > { %v3762_v55 = vpop.permute.xlu0 %1590 }
 0x8d0   : > { %v1734_v57 = vsel %vm901_vm2, %v3762_v55, 0 }
 0x989   : > { %v1504_v47 = vpop.f32.mrf.mxu0 }
 0x98a   : > { %v1505_v48 = vadd.f32 %v2522_v46, %v1504_v47 }
 0x98b   : > { %v2683_v50 = vpop.f32.mrf.mxu0 }
 0x98c   : > { %v1510_v51 = vpack.c.bf16 %v1505_v48, %v1505_v48 }
 0x98d   : > { %v1507_v52 = vpop.f32.mrf.mxu0 }
 0x98e   : > { %1579 = vrot.lane.b32.xlu1 %v1510_v51, %s3295_s24  ;;  %1583 = vrot.lane.b32.xlu0 %v1510_v51, %s3294_s28  ;;  %s3203_s28 = sshll.u32 %s3302_s26, 4  ;;  %s3204_s28 = int_to_ptr.vmem [resolvable:$false] %s3203_s28 }
 0x98f   : > { %2696 = vmatmul.mubr.msk.bf16.vlgmr.msra.gmra.mxu0 %vm901_vm2, %v1510_v51  ;;  %v2684_v54 = vpop.f32.mrf.mxu0  ;;  %s3205_s24 = scalar_lea.vmem %s3204_s28, 256 }
 0x990   : > { %2706 = vmatpush3.bf16.xpose.msra.mxu0 %v1688_v53  ;;  %2707 = vmatprep.mubr.msk.bf16.mxu0 %vm3293_vm1, %v3292_v8 }
 0x991   : > { %2717 = vmatprep.subr.bf16.mxu0 %v3292_v8 }
 0x992   : > { %1581 = vrot.lane.b32.xlu1 %v1510_v51, %s3296_s9  ;;  %s3966_s9 = sld [smem:[#allocation33_spill]] }
 0x998   : > { %s790_s23 = scalar_lea.vmem %s3966_s9, %s3570_s3  ;;  %s772_s3 = sand.u32 1, %s3271_s22  }
 0x999   : > { %v796_v60 = vld [vmem:[%s790_s23] sm:$0xff]  ;;  %s2279_s2 = scalar_lea.sflag [#allocation4], %s772_s3 }
 0xa00   : > { %v1580_v56 = vpop.permute.xlu1 %1579  ;;  %v1584_v59 = vpop.permute.xlu0 %1583 }
 0xa01   : > { %2702 = vmatmul.mubr.msk.bf16.vlgmr.msra.gmra.mxu1 %vm901_vm2, %v1580_v56 }
 0xa02   : > { %2712 = vmatpush3.bf16.xpose.msra.mxu1 %v1734_v57  ;;  %2713 = vmatprep.mubr.msk.bf16.mxu1 %vm3293_vm1, %v3292_v8 }
 0xa03   : > { %2723 = vmatprep.subr.bf16.mxu1 %v3292_v8 }
 0xa04   : > { %v1582_v58 = vpop.permute.xlu1 %1581 }
 0xa05   : > { %2708 = vmatmul.mubr.msk.bf16.vlgmr.msra.gmra.mxu0 %vm901_vm2, %v1582_v58 }
 0xa06   : > { %2719 = vmatprep.mubr.msk.bf16.mxu0 %vm3293_vm1, %v3292_v8 }
 0xa09   : > { %2714 = vmatmul.mubr.msk.bf16.vlgmr.msra.gmra.mxu1 %vm901_vm2, %v1584_v59 }
 0xa0a   : > { %2725 = vmatprep.mubr.msk.bf16.mxu1 %vm3293_vm1, %v3292_v8 }
 0xa4f   : > { %v1632_v61 = vpop.f32.mrf.mxu0 }
 0xa50   : > { %v1633_v62 = vadd.f32 %v1632_v61, %v796_v60 }
 0xa51   : > { %v2697_v63 = vpop.f32.mrf.mxu0 }
 0xa52   : > { %v1776_v1 = vsel %vm901_vm2, %v1633_v62, -inf }
 0xa53   : > { %1777 = vmax.xlane.f32.xlu1 %v1776_v1  ;;  %v1635_v2 = vpop.f32.mrf.mxu0 }
 0xa55   : > { %v2698_v3 = vpop.f32.mrf.mxu0 }
 0xac1   : > { %v1678_v4 = vpop.f32.mrf.mxu1 }
 0xac2   : > { %v1679_v5 = vadd.f32 %v1678_v4, %v796_v60 }
 0xac3   : > { %v2703_v6 = vpop.f32.mrf.mxu1 }
 0xac4   : > { %v1779_v7 = vsel %vm901_vm2, %v1679_v5, -inf }
 0xac5   : > { %v1724_v9 = vpop.f32.mrf.mxu0  ;;  %1780 = vmax.xlane.f32.xlu0 %v1779_v7  ;;  %v1681_v10 = vpop.f32.mrf.mxu1 }
 0xac6   : > { %v1725_v11 = vadd.f32 %v1724_v9, %v796_v60  ;;  %v2919_v9 = vld [vmem:[%s3913_s14 + $0x8] sm:$0xff]   ;;  %v2920_v10 = vld [vmem:[%s3913_s14] sm:$0xff]  }
 0xac7   : > { %v2704_v13 = vpop.f32.mrf.mxu1  ;;  %v2709_v14 = vpop.f32.mrf.mxu0 }
 0xac8   : > { %v1782_v15 = vsel %vm901_vm2, %v1725_v11, -inf }
 0xac9   : > { %v1727_v16 = vpop.f32.mrf.mxu0  ;;  %1783 = vmax.xlane.f32.xlu0 %v1782_v15  ;;  %v1770_v17 = vpop.f32.mrf.mxu1 }
 0xaca   : > { %v1771_v18 = vadd.f32 %v1770_v17, %v796_v60 }
 0xacb   : > { %v2710_v19 = vpop.f32.mrf.mxu0  ;;  %v2715_v20 = vpop.f32.mrf.mxu1 }
 0xacc   : > { %v1785_v21 = vsel %vm901_vm2, %v1771_v18, -inf }
 0xacd   : > { %1786 = vmax.xlane.f32.xlu1 %v1785_v21  ;;  %v1773_v0 = vpop.f32.mrf.mxu1 }
 0xacf   : > { %v2716_v22 = vpop.f32.mrf.mxu1 }
 0xadc   : > { %v1778_v23 = vpop.xlane.xlu1 %1777 }
 0xadd   : > { %v1788_v24 = vsub.f32 %v1633_v62, %v1778_v23 }
 0xade   : > { %1872 = vrot.lane.b32.xlu1 %v1587_v44, %s3297_s30 }
 0xadf   : > { %1824 = vrot.lane.b32.xlu0 %v3738_v40, %s3297_s30  ;;  %v1792_v25 = vmul.f32 1.442695, %v1788_v24 }
 0xae1   : > { %2947 = vpow2.f32 %v1792_v25 }
 0xaee   : > { %v2948_v26 = vpop.eup %2947 }
 0xaef   : > { %v1800_v30 = vsel %vm901_vm2, %v2948_v26, 0.0 }
 0xafe   : > { %1801 = vadd.xlane.f32.xlu0 %v1800_v30 }
 0xb4e   : > { %v1781_v31 = vpop.xlane.xlu0 %1780 }
 0xb4f   : > { %v1789_v28 = vsub.f32 %v1679_v5, %v1781_v31 }
 0xb51   : > { %v1794_v32 = vmul.f32 1.442695, %v1789_v28 }
 0xb52   : > { %v1784_v29 = vpop.xlane.xlu0 %1783 }
 0xb53   : > { %2949 = vpow2.f32 %v1794_v32  ;;  %v1790_v27 = vsub.f32 %v1725_v11, %v1784_v29  ;;  %v2538_v32 = vld [vmem:[#allocation11] ss:$0 sm:$0xff] }
 0xb55   : > { %v1796_v33 = vmul.f32 1.442695, %v1790_v27 }
 0xb56   : > { %v1825_v34 = vpop.permute.xlu0 %1824  ;;  %v1787_v35 = vpop.xlane.xlu1 %1786 }
 0xb57   : > { %2951 = vpow2.f32 %v1796_v33  ;;  %v1830_v36 = vsel %vm1145_vm3, %v1825_v34, 0  ;;  %v1791_v37 = vsub.f32 %v1771_v18, %v1787_v35 }
 0xb58   : > { %2718 = vmatpush3.bf16.msra.mxu0 %v1830_v36 }
 0xb59   : > { %v1798_v38 = vmul.f32 1.442695, %v1791_v37  ;;  %2729 = vmatprep.subr.bf16.mxu0 %v3292_v8 }
 0xb5a   : > { %v1873_v39 = vpop.permute.xlu1 %1872 }
 0xb5b   : > { %2953 = vpow2.f32 %v1798_v38  ;;  %v1878_v40 = vsel %vm1145_vm3, %v1873_v39, 0 }
 0xb5c   : > { %2724 = vmatpush3.bf16.msra.mxu1 %v1878_v40 }
 0xb5d   : > { %2735 = vmatprep.subr.bf16.mxu1 %v3292_v8 }
 0xb60   : > { %v2950_v41 = vpop.eup %2949 }
 0xb61   : > { %v1803_v42 = vsel %vm901_vm2, %v2950_v41, 0.0 }
 0xb62   : > { %1804 = vadd.xlane.f32.xlu1 %v1803_v42 }
 0xb64   : > { %v2952_v43 = vpop.eup %2951 }
 0xb65   : > { %v1806_v44 = vsel %vm901_vm2, %v2952_v43, 0.0 }
 0xb66   : > { %1807 = vadd.xlane.f32.xlu0 %v1806_v44  ;;  %v2922_v44 = vld [vmem:[#allocation13] sm:$0xff]  }
 0xb68   : > { %v2954_v45 = vpop.eup %2953 }
 0xb69   : > { %v1809_v46 = vsel %vm901_vm2, %v2954_v45, 0.0 }
 0xb6a   : > { %1810 = vadd.xlane.f32.xlu1 %v1809_v46 }
 0xb7b   : > { %1920 = vrot.lane.b32.xlu1 %v3751_v49, %s3297_s30 }
 0xb7c   : > { %1968 = vrot.lane.b32.xlu0 %v3762_v55, %s3297_s30  ;;  %s2497_s30 = sshll.u32 %s772_s3, 3 }
 0xb7d   : > { %s774_s25 = scalar_lea.vmem [#allocation17], %s2497_s30 }
 0xb87   : > { %v1802_v47 = vpop.xlane.xlu0 %1801 }
 0xb88   : > { %2955 = vrcp.f32 %v1802_v47 }
 0xb95   : > { %v2956_v48 = vpop.eup %2955 }
 0xb96   : > { %v1816_v50 = vmul.f32 %v2956_v48, %v2948_v26 }
 0xb98   : > { %v1820_v51 = vpack.c.bf16 %v1816_v50, %v1816_v50 }
 0xb9a   : > { %2720 = vmatmul.mubr.msk.bf16.vlgmr.msra.gmra.mxu0 %vm901_vm2, %v1820_v51  ;;  %v2542_v51 = vld [vmem:[#allocation2 + $0x2] ss:$0 sm:$0xff] }
 0xb9b   : > { %2731 = vmatprep.mubr.msk.bf16.mxu0 %vm3293_vm1, %v3292_v8 }
 0xbeb   : > { %v1805_v52 = vpop.xlane.xlu1 %1804 }
 0xbec   : > { %2957 = vrcp.f32 %v1805_v52 }
 0xbef   : > { %v1808_v53 = vpop.xlane.xlu0 %1807 }
 0xbf0   : > { %2959 = vrcp.f32 %v1808_v53  ;;  %v2543_v53 = vld [vmem:[#allocation5 + $0x2] ss:$0 sm:$0xff] }
 0xbf3   : > { %v1811_v54 = vpop.xlane.xlu1 %1810  ;;  %v1969_v58 = vpop.permute.xlu0 %1968 }
 0xbf4   : > { %2961 = vrcp.f32 %v1811_v54  ;;  %v1974_v61 = vsel %vm1145_vm3, %v1969_v58, 0  ;;  %v2544_v58 = vld [vmem:[#allocation14] ss:$0 sm:$0xff] }
 0xbf7   : > { %v1921_v49 = vpop.permute.xlu1 %1920 }
 0xbf8   : > { %v1926_v56 = vsel %vm1145_vm3, %v1921_v49, 0 }
 0xbf9   : > { %v2958_v55 = vpop.eup %2957  ;;  %2730 = vmatpush3.bf16.msra.mxu0 %v1926_v56 }
 0xbfa   : > { %v1817_v57 = vmul.f32 %v2958_v55, %v2950_v41  ;;  %2741 = vmatprep.subr.bf16.mxu0 %v3292_v8  ;;  %v2925_v55 = vld [vmem:[%s3917_s18 + $0x8] sm:$0xff]  }
 0xbfc   : > { %v1821_v59 = vpack.c.bf16 %v1817_v57, %v1817_v57  ;;  %v2926_v57 = vld [vmem:[%s3917_s18] sm:$0xff]  }
 0xbfd   : > { %v2960_v60 = vpop.eup %2959 }
 0xbfe   : > { %2726 = vmatmul.mubr.msk.bf16.vlgmr.msra.gmra.mxu1 %vm901_vm2, %v1821_v59  ;;  %v1818_v62 = vmul.f32 %v2960_v60, %v2952_v43  ;;  %v2921_v43 = vld [vmem:[#allocation13 + $0x8] sm:$0xff]  }
 0xbff   : > { %2736 = vmatpush3.bf16.msra.mxu1 %v1974_v61  ;;  %2737 = vmatprep.mubr.msk.bf16.mxu1 %vm3293_vm1, %v3292_v8 }
 0xc00   : > { %v1822_v63 = vpack.c.bf16 %v1818_v62, %v1818_v62  ;;  %2749 = vmatprep.subr.bf16.mxu1 %v3292_v8 }
 0xc01   : > { %v2962_v1 = vpop.eup %2961 }
 0xc02   : > { %2732 = vmatmul.mubr.msk.bf16.vlgmr.msra.gmra.mxu0 %vm901_vm2, %v1822_v63  ;;  %v1819_v2 = vmul.f32 %v2962_v1, %v2954_v45  ;;  %v2924_v45 = vld [vmem:[%s3917_s18 + $0x10] sm:$0xff]  }
 0xc03   : > { %2745 = vmatprep.mubr.msk.bf16.mxu0 %vm3293_vm1, %v3292_v8  ;;  %2742 = vmatpush3.bf16.msra.mxu0 %v2919_v9 }
 0xc04   : > { %v1823_v3 = vpack.c.bf16 %v1819_v2, %v1819_v2  ;;  %2743 = vmatprep.subr.bf16.mxu0 %v3292_v8 }
 0xc06   : > { %2738 = vmatmul.mubr.msk.bf16.vlgmr.msra.gmra.mxu1 %vm901_vm2, %v1823_v3  ;;  %v2548_v3 = vld [vmem:[#allocation16] ss:$0 sm:$0xff] }
 0xc07   : > { %2753 = vmatprep.mubr.msk.bf16.mxu1 %vm3293_vm1, %v3292_v8  ;;  %2744 = vmatpush3.bf16.msra.mxu0 %v2920_v10 }
 0xc08   : > { %2757 = vmatprep.subr.bf16.mxu0 %v3292_v8  ;;  %2750 = vmatpush3.bf16.msra.mxu1 %v2921_v43 }
 0xc09   : > { %2751 = vmatprep.subr.bf16.mxu1 %v3292_v8 }
 0xc0c   : > { %2752 = vmatpush3.bf16.msra.mxu1 %v2922_v44 }
 0xc5a   : > { %v1866_v4 = vpop.f32.mrf.mxu0 }
 0xc5c   : > { %v2721_v5 = vpop.f32.mrf.mxu0 }
 0xc5e   : > { %v1869_v6 = vpop.f32.mrf.mxu0 }
 0xc60   : > { %v2722_v7 = vpop.f32.mrf.mxu0 }
 0xcbe   : > { %v1914_v11 = vpop.f32.mrf.mxu1 }
 0xcbf   : > { %2017 = vrot.lane.b32.xlu1 %v1914_v11, %s3299_s27 }
 0xcc0   : > { %v2727_v13 = vpop.f32.mrf.mxu1 }
 0xcc2   : > { %v1917_v14 = vpop.f32.mrf.mxu1  ;;  %v1962_v15 = vpop.f32.mrf.mxu0 }
 0xcc3   : > { %2021 = vrot.lane.b32.xlu0 %v1962_v15, %s3967_s21  ;;  %s2292_s21 = sshll.u32 %s774_s25, 4  ;;  %s3859_s21 = int_to_ptr.vmem [resolvable:$true] %s2292_s21 }
 0xcc4   : > { %v2728_v16 = vpop.f32.mrf.mxu1  ;;  %v2733_v17 = vpop.f32.mrf.mxu0  ;;  %s3199_s1 = scalar_lea.vmem %s3859_s21, 128  ;;  %p3206_p13 = scmp.lt.s32.totalorder %s3859_s21, %s3204_s28 }
 0xcc5   : > { %p3200_p1 = scmp.ne.s32.totalorder %s3859_s21, %s3199_s1  ;;  %p3207_p5 = scmp.lt.s32.totalorder %s3205_s24, %s3199_s1 }
 0xcc6   : > { %v1965_v18 = vpop.f32.mrf.mxu0  ;;  %v2010_v19 = vpop.f32.mrf.mxu1 }
 0xcc7   : > { %2025 = vrot.lane.b32.xlu1 %v2010_v19, %s3968_s0  ;;  %p3201_p9 = pnand %p3200_p1, %p3969_p2  ;;  %p3208_p6 = por %p3207_p5, %p3206_p13 }
 0xcc8   : > { %v2734_v20 = vpop.f32.mrf.mxu0  ;;  %v2739_v21 = vpop.f32.mrf.mxu1 }
 0xcc9   : > { %p3202_p3 = pneg %p3201_p9 }
 0xcca   : > { %v2013_v0 = vpop.f32.mrf.mxu1 }
 0xccb   : > { %p3209_p10 = pnand %p3208_p6, %p3202_p3 }
 0xccc   : > { %v2740_v22 = vpop.f32.mrf.mxu1 }
 0xd31   : > { %v2018_v23 = vpop.permute.xlu1 %2017 }
 0xd32   : > { %v2028_v25 = vsel %vm901_vm2, %v1866_v4, %v2018_v23 }
 0xd35   : > { %v2022_v24 = vpop.permute.xlu0 %2021 }
 0xd36   : > { %v2029_v26 = vsel %vm1346_vm4, %v2028_v25, %v2022_v24 }
 0xd39   : > { %v2026_v30 = vpop.permute.xlu1 %2025 }
 0xd3a   : > { %v2030_v31 = vsel %vm1348_vm5, %v2029_v26, %v2026_v30 }
 0xd3b   : > { %v2031_v28 = vpack.c.bf16 %v2030_v31, %v2030_v31 }
 0xd3d   : > { %2746 = vmatmul.mubr.msk.bf16.vlgmr.msra.gmra.mxu0 %vm799_vm0, %v2031_v28 }
 0xd3e   : > { %2765 = vmatprep.mubr.msk.bf16.mxu0 %vm3293_vm1, %v3292_v8 }
 0xdfd   : > { %v2092_v29 = vpop.f32.mrf.mxu0 }
 0xdfe   : > { %v2093_v27 = vadd.f32 %v2538_v32, %v2092_v29 }
 0xdff   : > { %v2747_v33 = vpop.f32.mrf.mxu0 }
 0xe00   : > { %v2098_v34 = vadd.f32 %v2093_v27, %v3706_v12  ;;  %v2923_v12 = vld [vmem:[%s3917_s18 + $0x18] sm:$0xff]  }
 0xe01   : > { %v2095_v35 = vpop.f32.mrf.mxu0  ;;  %2758 = vmatpush3.bf16.msra.mxu0 %v2923_v12 }
 0xe02   : > { %v2101_v36 = vsel %vm799_vm0, %v2098_v34, 0.0  ;;  %2759 = vmatprep.subr.bf16.mxu0 %v3292_v8 }
 0xe03   : > { %2102 = vadd.xlane.f32.xlu0 %v2101_v36  ;;  %v2748_v37 = vpop.f32.mrf.mxu0 }
 0xe05   : > { %2760 = vmatpush3.bf16.msra.mxu0 %v2924_v45 }
 0xe06   : > { %2761 = vmatprep.subr.bf16.mxu0 %v3292_v8 }
 0xe09   : > { %2762 = vmatpush3.bf16.msra.mxu0 %v2925_v55 }
 0xe0a   : > { %2763 = vmatprep.subr.bf16.mxu0 %v3292_v8 }
 0xe0d   : > { %2764 = vmatpush3.bf16.msra.mxu0 %v2926_v57 }
 0xe8c   : > { %v2103_v38 = vpop.xlane.xlu0 %2102 }
 0xe8d   : > { %v2104_v39 = vmul.f32 0.03125, %v2103_v38 }
 0xe8f   : > { %v2105_v40 = vsub.f32 %v2098_v34, %v2104_v39 }
 0xe91   : > { %v2106_v41 = vmul.f32 %v2105_v40, %v2105_v40 }
 0xe93   : > { %v2107_v42 = vsel %vm799_vm0, %v2106_v41, 0.0 }
 0xe94   : > { %2108 = vadd.xlane.f32.xlu1 %v2107_v42 }
 0xf1d   : > { %v2109_v46 = vpop.xlane.xlu1 %2108 }
 0xf1e   : > { %v2110_v47 = vmul.f32 0.03125, %v2109_v46 }
 0xf20   : > { %v2111_v48 = vadd.f32 1e-06, %v2110_v47 }
 0xf22   : > { %2963 = vrsqrt.f32 %v2111_v48 }
 0xf2f   : > { %v2964_v50 = vpop.eup %2963 }
 0xf30   : > { %v2113_v52 = vmul.f32 %v2964_v50, %v2105_v40 }
 0xf32   : > { %v2118_v54 = vmul.f32 %v2542_v51, %v2113_v52 }
 0xf34   : > { %v2123_v49 = vadd.f32 %v2543_v53, %v2118_v54 }
 0xf36   : > { %v2124_v56 = vpack.c.bf16 %v2123_v49, %v2123_v49 }
 0xf38   : > { %2754 = vmatmul.mubr.msk.bf16.vlgmr.msra.gmra.mxu1 %vm799_vm0, %v2124_v56 }
 0xff8   : > { %v2185_v59 = vpop.f32.mrf.mxu1 }
 0xff9   : > { %v2186_v60 = vadd.f32 %v2544_v58, %v2185_v59 }
 0xffa   : > { %v2755_v61 = vpop.f32.mrf.mxu1 }
 0xffb   : > { %v2191_v62 = vmax.f32 %v2186_v60, 0.0 }
 0xffc   : > { %v2188_v63 = vpop.f32.mrf.mxu1 }
 0xffd   : > { %v2192_v1 = vpack.c.bf16 %v2191_v62, %v2191_v62 }
 0xffe   : > { %v2756_v2 = vpop.f32.mrf.mxu1 }
 0xfff   : > { %2766 = vmatmul.mubr.msk.bf16.vlgmr.msra.gmra.mxu0 %vm2232_vm6, %v2192_v1 }
0x10bf   : > { %v2270_v8 = vpop.f32.mrf.mxu0 }
0x10c0   : > { %v2271_v4 = vadd.f32 %v2548_v3, %v2270_v8 }
0x10c1   : > { %v2767_v5 = vpop.f32.mrf.mxu0 }
0x10c2   : > { %v2276_v6 = vadd.f32 %v2271_v4, %v2098_v34 }
0x10c3   : > { %v2273_v7 = vpop.f32.mrf.mxu0 }
0x10c4   : > { %2277 = vst.msk [vmem:[%s774_s25] sm:$0xff] %vm799_vm0, %v2276_v6 }
0x10c5   : > { %v2768_v9 = vpop.f32.mrf.mxu0 }
0x10c6   : > { %3212 = shalt.err (!%p3209_p10)
}
0x10c7   : > { %s3213_s9 = scalar_lea.hbm %s3857_s29, 128  ;;  %s3217_s30 = scalar_lea.hbm %s3919_s20, 256 }
0x10c8   : > { %p3214_p12 = scmp.ne.s32.totalorder %s3857_s29, %s3213_s9  ;;  %p3218_p8 = scmp.lt.s32.totalorder %s3857_s29, %s3919_s20 }
0x10c9   : > { %p3219_p11 = scmp.lt.s32.totalorder %s3217_s30, %s3213_s9 }
0x10ca   : > { %p3215_p4 = pnand %p3214_p12, %p3969_p2 }
0x10cb   : > { %p3220_p0 = por %p3219_p11, %p3218_p8 }
0x10cc   : > { %p3216_p7 = pneg %p3215_p4 }
0x10ce   : > { %p3221_p1 = pnand %p3220_p0, %p3216_p7 }
0x10d0   : > { %3224 = shalt.err (!%p3221_p1)
}
0x10d1   : > { %2805 = dma.vmem_to_hbm [thread:$0]  (%p3969_p2), %s3859_s21, 128, %s3857_s29, %s2279_s2  }
0x10d2 PF: > { %s3970_s0 = sld [smem:[#allocation26_spill]] }
0x10d3   : > { %s3971_s27 = sld [smem:[#allocation24_spill]] }
0x10d4   : > { %s3972_s1 = sld [smem:[#allocation29_spill]] }
0x10d8   : > { %p2857_p9 = scmp.ge.s32.totalorder %s3970_s0, 2 }
0x10d9   : > { %s2304_s26 = sand.u32 1, %s3971_s27  }
0x10da   : > { %p3973_p3 = scmp.ne.s32.totalorder %s3972_s1, 0  ;;  %s2305_s28 = scalar_lea.sflag [#allocation4], %s2304_s26 }
0x10dc   : > { %p2836_p13 = pnand %p2857_p9, %p3973_p3 }
0x10de   : > { %p2837_p5 = pneg %p2836_p13 }
0x10e0   : > { %3262 = dma.done.wait (%p2837_p5), %s2305_s28, 128  }
0x10e1   : > { %3264 = vsyncadd (%p2837_p5), %s2305_s28, 4294967168  ;;  %s3974_s24 = sld [smem:[#allocation27_spill]]  ;;  %s3977_s1 = smov %s3271_s22 }
0x10e2   : > { %s3975_s9 = sld [smem:[#allocation25_spill]] }
0x10e3   : > { %s3976_s23 = sld [smem:[#allocation28_spill]] }
0x10e7   : > { %p35_p6 = scmp.ge.s32.totalorder %s3974_s24, 4  }
0x10e8   : > { %s3978_s22 = smov %s3975_s9 }
0x10e9   :  { %37 = sbr.rel (!%p35_p6) target bundleno = 16 (0x10), region = 181 }
0x10ee   :  { %2310 = vsyncpa [#allocation3], 1 }
0x10ef   :  { %2312 = vsyncpa [#allocation3 + $0x1], 1 }
0x10f0   :  { %2313 = vsyncpa [#allocation6], 1 }
0x10f1   :  { %2314 = vsyncpa [#allocation9], 1 }
0x10f2   :  { %2315 = vsyncpa [#allocation12], 1 }
0x10f3   :  { %2316 = vsyncpa [#allocation15], 1 }
0x10f4   :  { %2317 = vsyncpa [#allocation4], 1 }
0x10f5   :  { %2319 = vsyncpa [#allocation4 + $0x1], 1 }

</bundles_post_ra>
